<compile_context>
chip_gen: v7x
topology: tpu7x:2x2x1
jax: 0.10.0
libtpu: 0.0.40
codegen_flags: <defaults>
</compile_context>

<pallas_src>
import jax
import jax.numpy as jnp
from jax.experimental import pallas as pl
from jax.experimental.pallas import tpu as pltpu


def _round_up(x, m):
    return (x + m - 1) // m * m


# ----------------------------------------------------------------------------- kernel
def discriminator_kernel(x_ref, w1_ref, t1_ref, w2_ref, t2_ref, w3_ref, b3_ref, y_ref):
    # x_ref: (T, F) row tile (f32 or bf16). Cast to bf16 in-kernel (VPU) for the MXU.
    x = x_ref[...].astype(jnp.bfloat16)

    # Layer 1: Linear (BN scale pre-folded into W1) -> add shift -> ReLU.
    z1 = jnp.dot(x, w1_ref[...], preferred_element_type=jnp.float32)     # (T, H) f32
    h1 = jnp.maximum(z1 + t1_ref[...], 0.0)                              # add + ReLU only

    # Layer 2: Linear (BN scale pre-folded into W2) -> add shift -> ReLU.
    z2 = jnp.dot(h1.astype(jnp.bfloat16), w2_ref[...],
                 preferred_element_type=jnp.float32)                     # (T, H) f32
    h2 = jnp.maximum(z2 + t2_ref[...], 0.0)

    # Layer 3: Linear(H, 1) as broadcast-mul + lane reduce (w3 pre-transposed to (1, H)).
    logits = jnp.sum(h2 * w3_ref[...], axis=-1, keepdims=True) + b3_ref[0, 0]   # (T, 1)
    y_ref[...] = jax.nn.sigmoid(logits).astype(y_ref.dtype)


# ----------------------------------------------------------------------------- wrapper
def domain_discriminator_forward(x, kernel_params, *, block_rows=256):
    """x: (N, F) features (f32 or bf16, no wrapper-side cast). Returns y: (N, 1) f32."""
    w1, t1, w2, t2, w3t, b3 = kernel_params
    n, f = x.shape
    h = w1.shape[1]

    # Row tile: multiple of 256 for v6e/v7x MXU when the batch is big enough,
    # multiple of 16 (bf16 sublane packing) for small batches. No padding of x:
    # a partial last block is handled by the pipeline (rows are independent).
    block_rows = max(16, _round_up(block_rows, 16))
    tile = block_rows if n >= block_rows else _round_up(n, 16)
    grid = (pl.cdiv(n, tile),)

    # VMEM budget: double-buffered x tiles + single-buffered resident weights +
    # f32 intermediates, with headroom; clamp under the chip's physical VMEM
    # (64 MiB per TC on v7x, 128 MiB on v5e/v6e).
    x_stream = 2 * tile * f * x.dtype.itemsize
    weights = (f * h + h * h) * 2 + 3 * h * 4          # bf16 W1/W2 + f32 t1/t2/w3
    interm = 4 * tile * h * 4 + 2 * tile * 4           # f32 temporaries + y buffers
    needed = x_stream + weights + interm
    try:
        vmem_phys = int(pltpu.get_tpu_info().vmem_capacity_bytes)
    except Exception:
        vmem_phys = 64 * 1024 * 1024                   # v7x per-TC floor
    vmem_limit = int(min(max(2 * needed, 32 * 1024 * 1024), 0.85 * vmem_phys))

    def _resident(shape):
        # Constant index_map => fetched once; single buffer (no double buffering).
        return pl.BlockSpec(shape, lambda i: (0, 0), pipeline_mode=pl.Buffered(1))

    y = pl.pallas_call(
        discriminator_kernel,
        out_shape=jax.ShapeDtypeStruct((n, 1), jnp.float32),
        grid=grid,
        in_specs=[
            pl.BlockSpec((tile, f), lambda i: (i, 0)),          # x: streamed row tiles
            _resident((f, h)),                                  # W1*diag(s1), bf16
            _resident((1, h)),                                  # BN1 shift t1, f32
            _resident((h, h)),                                  # W2*diag(s2), bf16
            _resident((1, h)),                                  # BN2 shift t2, f32
            _resident((1, h)),                                  # w3^T (1, H), f32
            pl.BlockSpec(memory_space=pltpu.MemorySpace.SMEM),  # b3 scalar (1, 1)
        ],
        out_specs=pl.BlockSpec((tile, 1), lambda i: (i, 0)),
        compiler_params=pltpu.CompilerParams(
            dimension_semantics=("parallel",),                  # disjoint row tiles
            vmem_limit_bytes=vmem_limit,
        ),
    )(x, w1, t1, w2, t2, w3t, b3)

    return y


# ----------------------------------------------------------------------------- params
def init_raw_params(key, in_feature, hidden_size):
    """PyTorch-style init: Linear U(+-1/sqrt(fan_in)); BN params randomized (eval stats)."""
    ks = jax.random.split(key, 14)

    def linear(kw, kb, fan_in, fan_out):
        bound = fan_in ** -0.5
        w = jax.random.uniform(kw, (fan_in, fan_out), jnp.float32, -bound, bound)
        b = jax.random.uniform(kb, (fan_out,), jnp.float32, -bound, bound)
        return w, b

    def bn(kg, kb, km, kv, nf):
        gamma = jax.random.uniform(kg, (nf,), jnp.float32, 0.5, 1.5)
        beta = 0.1 * jax.random.normal(kb, (nf,), jnp.float32)
        mean = 0.1 * jax.random.normal(km, (nf,), jnp.float32)
        var = jax.random.uniform(kv, (nf,), jnp.float32, 0.5, 1.5)
        return gamma, beta, mean, var

    w1, b1 = linear(ks[0], ks[1], in_feature, hidden_size)
    g1, be1, m1, v1 = bn(ks[2], ks[3], ks[4], ks[5], hidden_size)
    w2, b2 = linear(ks[6], ks[7], hidden_size, hidden_size)
    g2, be2, m2, v2 = bn(ks[8], ks[9], ks[10], ks[11], hidden_size)
    w3, b3 = linear(ks[12], ks[13], hidden_size, 1)
    return (w1, b1, g1, be1, m1, v1, w2, b2, g2, be2, m2, v2, w3, b3)


def prepare_params(raw_params, eps=1e-5):
    """Fold eval-mode BN into the weights: W <- W*diag(s), shift t = (b-mean)*s + beta.

    After the fold the kernel epilogue is only add + ReLU (no per-channel multiply).
    MXU weights are cast to bf16; shift vectors stay f32.
    """
    (w1, b1, g1, be1, m1, v1, w2, b2, g2, be2, m2, v2, w3, b3) = raw_params

    def fold(w, b, g, be, m, v):
        s = g / jnp.sqrt(v + eps)                        # gamma * rsqrt(var + eps)
        w_f = (w * s[None, :]).astype(jnp.bfloat16)      # BN scale folded into columns
        t = ((b - m) * s + be).reshape(1, -1).astype(jnp.float32)
        return w_f, t

    w1f, t1 = fold(w1, b1, g1, be1, m1, v1)
    w2f, t2 = fold(w2, b2, g2, be2, m2, v2)
    return (w1f, t1, w2f, t2,
            w3.reshape(1, -1).astype(jnp.float32),       # pre-transposed to (1, H)
            jnp.asarray(b3, jnp.float32).reshape(1, 1))


# ----------------------------------------------------------------------------- references
def _reference_f32(x, raw_params, eps=1e-5):
    """Full-f32 eval-mode forward (PyTorch DomainDiscriminator.eval() semantics)."""
    (w1, b1, g1, be1, m1, v1, w2, b2, g2, be2, m2, v2, w3, b3) = raw_params
    xf = x.astype(jnp.float32)
    z1 = xf @ w1 + b1
    h1 = jnp.maximum((z1 - m1) * (g1 / jnp.sqrt(v1 + eps)) + be1, 0.0)
    z2 = h1 @ w2 + b2
    h2 = jnp.maximum((z2 - m2) * (g2 / jnp.sqrt(v2 + eps)) + be2, 0.0)
    return jax.nn.sigmoid(h2 @ w3 + b3)


def _reference_matched(x, kernel_params):
    """Pure-JAX reference with the kernel's exact dtype/fold strategy (bf16 MXU, f32 acc)."""
    w1, t1, w2, t2, w3t, b3 = kernel_params
    xb = x.astype(jnp.bfloat16)
    z1 = jnp.dot(xb, w1, preferred_element_type=jnp.float32)
    h1 = jnp.maximum(z1 + t1, 0.0)
    z2 = jnp.dot(h1.astype(jnp.bfloat16), w2, preferred_element_type=jnp.float32)
    h2 = jnp.maximum(z2 + t2, 0.0)
    logits = jnp.sum(h2 * w3t, axis=-1, keepdims=True) + b3[0, 0]
    return jax.nn.sigmoid(logits)


# ----------------------------------------------------------------------------- self-test
if __name__ == "__main__":
    # Small but MXU-friendly feature widths; N chosen NOT divisible by the 256-row
    # tile to exercise the no-pad / partial-last-block path.
    N, F, H = 384, 128, 128

    key = jax.random.PRNGKey(0)
    kx, kp = jax.random.split(key)
    x = jax.random.normal(kx, (N, F), jnp.float32)        # f32 input: cast happens in-kernel

    raw_params = init_raw_params(kp, F, H)
    kernel_params = prepare_params(raw_params)

    y = domain_discriminator_forward(x, kernel_params, block_rows=256)   # grid of 2 tiles
    jax.block_until_ready(y)
    assert y.shape == (N, 1)

    # Exact-math check against a pure-JAX reference using the same fold + dtype strategy.
    y_match = _reference_matched(x, kernel_params)
    assert jnp.allclose(y, y_match, rtol=1e-4, atol=1e-4), float(jnp.max(jnp.abs(y - y_match)))

    # Sanity check against full-f32 eval-mode semantics (bf16 quantization tolerance).
    y_f32 = _reference_f32(x, raw_params)
    assert jnp.allclose(y, y_f32, rtol=0.0, atol=5e-2), float(jnp.max(jnp.abs(y - y_f32)))

    print("KERNEL_OK")
</pallas_src>

<mosaic_0001>
module attributes {stable_mosaic.version = 11 : i64} {
  func.func @discriminator_kernel(%arg0: i32, %arg1: memref<256x128xf32, #tpu.memory_space<vmem>>, %arg2: memref<128x128xbf16, #tpu.memory_space<vmem>>, %arg3: memref<1x128xf32, #tpu.memory_space<vmem>>, %arg4: memref<128x128xbf16, #tpu.memory_space<vmem>>, %arg5: memref<1x128xf32, #tpu.memory_space<vmem>>, %arg6: memref<1x128xf32, #tpu.memory_space<vmem>>, %arg7: memref<1x1xf32, #tpu.memory_space<smem>>, %arg8: memref<256x1xf32, #tpu.memory_space<vmem>>) attributes {dimension_semantics = [#tpu.dimension_semantics<parallel>], iteration_bounds = array<i64: 2>, scalar_prefetch = 0 : i64, scratch_operands = 0 : i64, tpu.core_type = #tpu.core_type<tc>, window_params = [{transform_indices = @transform_0, window_bounds = array<i64: 256, 128>}, {pipeline_mode = #tpu.pipeline_mode<synchronous>, transform_indices = @transform_1, window_bounds = array<i64: 128, 128>}, {pipeline_mode = #tpu.pipeline_mode<synchronous>, transform_indices = @transform_2, window_bounds = array<i64: 1, 128>}, {pipeline_mode = #tpu.pipeline_mode<synchronous>, transform_indices = @transform_3, window_bounds = array<i64: 128, 128>}, {pipeline_mode = #tpu.pipeline_mode<synchronous>, transform_indices = @transform_4, window_bounds = array<i64: 1, 128>}, {pipeline_mode = #tpu.pipeline_mode<synchronous>, transform_indices = @transform_5, window_bounds = array<i64: 1, 128>}, {transform_indices = @transform_6, window_bounds = array<i64: 1, 1>}, {transform_indices = @transform_7, window_bounds = array<i64: 256, 1>}]} {
    %c0 = arith.constant 0 : index
    %c0_0 = arith.constant 0 : index
    %0 = vector.load %arg1[%c0, %c0_0] : memref<256x128xf32, #tpu.memory_space<vmem>>, vector<256x128xf32>
    %1 = arith.truncf %0 : vector<256x128xf32> to vector<256x128xbf16>
    %c0_1 = arith.constant 0 : index
    %c0_2 = arith.constant 0 : index
    %2 = vector.load %arg2[%c0_1, %c0_2] : memref<128x128xbf16, #tpu.memory_space<vmem>>, vector<128x128xbf16>
    %cst = arith.constant dense<0.000000e+00> : vector<256x128xf32>
    %3 = tpu.matmul %1, %2, %cst {dimension_numbers = #tpu.dot_dimension_numbers<[1], [0], [0], [1], [0, 0, 1, 1], [], []>} : vector<256x128xbf16>, vector<128x128xbf16>, vector<256x128xf32> -> vector<256x128xf32>
    %c0_3 = arith.constant 0 : index
    %c0_4 = arith.constant 0 : index
    %4 = vector.load %arg3[%c0_3, %c0_4] : memref<1x128xf32, #tpu.memory_space<vmem>>, vector<1x128xf32>
    %5 = vector.broadcast %4 : vector<1x128xf32> to vector<256x128xf32>
    %6 = arith.addf %3, %5 : vector<256x128xf32>
    %cst_5 = arith.constant 0.000000e+00 : f32
    %7 = vector.broadcast %cst_5 : f32 to vector<256x128xf32>
    %8 = arith.maximumf %6, %7 : vector<256x128xf32>
    %9 = arith.truncf %8 : vector<256x128xf32> to vector<256x128xbf16>
    %c0_6 = arith.constant 0 : index
    %c0_7 = arith.constant 0 : index
    %10 = vector.load %arg4[%c0_6, %c0_7] : memref<128x128xbf16, #tpu.memory_space<vmem>>, vector<128x128xbf16>
    %cst_8 = arith.constant dense<0.000000e+00> : vector<256x128xf32>
    %11 = tpu.matmul %9, %10, %cst_8 {dimension_numbers = #tpu.dot_dimension_numbers<[1], [0], [0], [1], [0, 0, 1, 1], [], []>} : vector<256x128xbf16>, vector<128x128xbf16>, vector<256x128xf32> -> vector<256x128xf32>
    %c0_9 = arith.constant 0 : index
    %c0_10 = arith.constant 0 : index
    %12 = vector.load %arg5[%c0_9, %c0_10] : memref<1x128xf32, #tpu.memory_space<vmem>>, vector<1x128xf32>
    %13 = vector.broadcast %12 : vector<1x128xf32> to vector<256x128xf32>
    %14 = arith.addf %11, %13 : vector<256x128xf32>
    %cst_11 = arith.constant 0.000000e+00 : f32
    %15 = vector.broadcast %cst_11 : f32 to vector<256x128xf32>
    %16 = arith.maximumf %14, %15 : vector<256x128xf32>
    %c0_12 = arith.constant 0 : index
    %c0_13 = arith.constant 0 : index
    %17 = vector.load %arg6[%c0_12, %c0_13] : memref<1x128xf32, #tpu.memory_space<vmem>>, vector<1x128xf32>
    %18 = vector.broadcast %17 : vector<1x128xf32> to vector<256x128xf32>
    %19 = arith.mulf %16, %18 : vector<256x128xf32>
    %cst_14 = arith.constant dense<0.000000e+00> : vector<256xf32>
    %20 = vector.multi_reduction <add>, %19, %cst_14 [1] : vector<256x128xf32> to vector<256xf32>
    %21 = vector.shape_cast %20 : vector<256xf32> to vector<256x1xf32>
    %c0_15 = arith.constant 0 : index
    %c0_16 = arith.constant 0 : index
    %22 = memref.load %arg7[%c0_15, %c0_16] : memref<1x1xf32, #tpu.memory_space<smem>>
    %23 = vector.broadcast %22 : f32 to vector<256x1xf32>
    %24 = arith.addf %21, %23 : vector<256x1xf32>
    %25 = arith.negf %24 : vector<256x1xf32>
    %26 = math.exp %25 : vector<256x1xf32>
    %cst_17 = arith.constant 1.000000e+00 : f32
    %27 = vector.broadcast %cst_17 : f32 to vector<256x1xf32>
    %28 = arith.addf %27, %26 : vector<256x1xf32>
    %29 = arith.divf %27, %28 : vector<256x1xf32>
    %c0_18 = arith.constant 0 : index
    %c0_19 = arith.constant 0 : index
    %30 = vector.load %arg8[%c0_18, %c0_19] : memref<256x1xf32, #tpu.memory_space<vmem>>, vector<256x1xf32>
    tpu.vector_store %arg8[%c0_18, %c0_19], %29 {strides = array<i32>} : memref<256x1xf32, #tpu.memory_space<vmem>>, vector<256x1xf32>,
    return
  }
  func.func @transform_0(%arg0: i32) -> (i32, i32) {
    %c0_i32 = arith.constant 0 : i32
    %c0_i32_0 = arith.constant 0 : i32
    return %arg0, %c0_i32 : i32, i32
  }
  func.func @transform_1(%arg0: i32) -> (i32, i32) {
    %c0_i32 = arith.constant 0 : i32
    %c0_i32_0 = arith.constant 0 : i32
    %c0_i32_1 = arith.constant 0 : i32
    return %c0_i32, %c0_i32_0 : i32, i32
  }
  func.func @transform_2(%arg0: i32) -> (i32, i32) {
    %c0_i32 = arith.constant 0 : i32
    %c0_i32_0 = arith.constant 0 : i32
    %c0_i32_1 = arith.constant 0 : i32
    return %c0_i32, %c0_i32_0 : i32, i32
  }
  func.func @transform_3(%arg0: i32) -> (i32, i32) {
    %c0_i32 = arith.constant 0 : i32
    %c0_i32_0 = arith.constant 0 : i32
    %c0_i32_1 = arith.constant 0 : i32
    return %c0_i32, %c0_i32_0 : i32, i32
  }
  func.func @transform_4(%arg0: i32) -> (i32, i32) {
    %c0_i32 = arith.constant 0 : i32
    %c0_i32_0 = arith.constant 0 : i32
    %c0_i32_1 = arith.constant 0 : i32
    return %c0_i32, %c0_i32_0 : i32, i32
  }
  func.func @transform_5(%arg0: i32) -> (i32, i32) {
    %c0_i32 = arith.constant 0 : i32
    %c0_i32_0 = arith.constant 0 : i32
    %c0_i32_1 = arith.constant 0 : i32
    return %c0_i32, %c0_i32_0 : i32, i32
  }
  func.func @transform_6(%arg0: i32) -> (i32, i32) {
    %c0_i32 = arith.constant 0 : i32
    %c0_i32_0 = arith.constant 0 : i32
    %c0_i32_1 = arith.constant 0 : i32
    return %c0_i32, %c0_i32_0 : i32, i32
  }
  func.func @transform_7(%arg0: i32) -> (i32, i32) {
    %c0_i32 = arith.constant 0 : i32
    %c0_i32_0 = arith.constant 0 : i32
    return %arg0, %c0_i32 : i32, i32
  }
}

</mosaic_0001>

<bundles_post_ra>
// kernel: tpu_custom_call.1
= control target key start
LH: loop header
LB: loop body
LE: loop exit
PB: predicated region body
PF: predicated region fallthrough
CT: control target
= control target key end

     0   :  { %s2960_s0 = inlined_call_operand.hbm [shape: f32[384,128], index: 0, kind: input, shape index: {}]   ;;  %s2961_s1 = inlined_call_operand.hbm [shape: bf16[128,128], index: 1, kind: input, shape index: {}]   ;;  %s2962_s2 = inlined_call_operand.vmem [shape: f32[1,128], index: 2, kind: input, shape index: {}]   ;;  %s2963_s3 = inlined_call_operand.hbm [shape: bf16[128,128], index: 3, kind: input, shape index: {}]   ;;  %s2964_s4 = inlined_call_operand.vmem [shape: f32[1,128], index: 4, kind: input, shape index: {}]   ;;  %s2965_s5 = inlined_call_operand.vmem [shape: f32[1,128], index: 5, kind: input, shape index: {}]   ;;  %s2966_s6 = inlined_call_operand.<no memory space> [shape: f32[1,1], index: 6, kind: input, shape index: {}]   ;;  %s2967_s7 = inlined_call_operand.vmem [shape: f32[384,1], index: 7, kind: output, shape index: {}]  }
   0x1   :  { %12 = sst [smem:[#allocation2]] %s2966_s6 }
   0x2   :  { %13 = vsyncpa [#allocation4], 0 }
   0x3   :  { %15 = vsyncpa [#allocation4 + $0x1], 0 }
   0x4   :  { %16 = vsyncpa [#allocation6], 0  ;;  %s2400_s26 = smov 0   ;;  %s2402_s27 = smov 0  }
   0x5   :  { %s2404_s28 = smov 0   ;;  %s2406_s29 = smov 0  }
   0x6 LB: > { %s2419_s6 = sadd.s32 4294967295, %s2316_s29   ;;  %s2422_s30 = sadd.s32 1, %s2316_s29   ;;  %s2316_s29 = sphi %s2406_s29, %s2990_s29   ;;  %s2312_s28 = sphi %s2404_s28, %s2989_s28   ;;  %s2308_s27 = sphi %s2402_s27, %s2988_s27   ;;  %s2304_s26 = sphi %s2400_s26, %s2987_s26  }
   0x7   : > { %s26_s8 = ssub.s32 %s2316_s29, %s2422_s30  ;;  %s29_s9 = sadd.s32 1, %s2312_s28 }
   0x8   : > { %p27_p0 = scmp.eq.s32.totalorder %s26_s8, 0  ;;  %p36_p1 = scmp.ne.s32.totalorder %s2312_s28, %s2308_s27 }
   0x9   : > { %p37_p2 = scmp.eq.s32.totalorder %s2316_s29, 0  ;;  %p42_p3 = scmp.ne.s32.totalorder %s2308_s27, %s2304_s26 }
   0xa   : > { %s2432_s10 = scalar_select %p27_p0, %s2312_s28, %s29_s9  }
   0xb   : > { %p2434_p4 = por %p37_p2, %p36_p1  ;;  %p2968_p5 = scmp.eq.s32.totalorder %s2419_s6, 0 }
   0xc   : > { %p192_p6 = scmp.eq.s32.totalorder %s2419_s6, 1  ;;  %p1664_p7 = scmp.ge.s32.totalorder %s2316_s29, 1 }
   0xd   : > { %s2971_s11 = scalar_select %p2434_p4, 1, 0 }
   0xe   : > { %p2443_p8 = por %p2968_p5, %p42_p3  ;;  %p205_p9 = scmp.lt.s32.totalorder %s2316_s29, 3 }
   0xf   : > { %p2448_p10 = por %p192_p6, %p36_p1  ;;  %s2350_s15 = smov [#allocation5]  }
  0x10   : > { %s2972_s12 = scalar_select %p2443_p8, 1, 0 }
  0x11   : > { %s2973_s13 = scalar_select %p2448_p10, 1, 0 }
  0x12   : > { %p2452_p11 = pnand %p1664_p7, %p205_p9  ;;  %s217_s16 = sshll.u32 %s2350_s15, 4  ;;  %s218_s16 = int_to_ptr.vmem [resolvable:$true] %s217_s16 }
  0x13   : > { %s2351_s18 = smov [#allocation7]   ;;  %s2162_s22 = scalar_lea.hbm %s2961_s1, 1024 }
  0x14   : > { %s2974_s14 = scalar_select %p2452_p11, 1, 0 }
  0x15   : > { %p1905_p12 = pneg %p2452_p11  ;;  %s233_s19 = sshll.u32 %s2351_s18, 4  ;;  %s2464_s19 = int_to_ptr.vmem [resolvable:$true] %s233_s19 }
  0x16   : > { %p2163_p0 = scmp.ne.s32.totalorder %s2961_s1, %s2162_s22  ;;  %p2169_p6 = scmp.lt.u32.totalorder %s2162_s22, %s2961_s1 }
  0x17   : > { %p2460_p13 = pnand %p1905_p12, %p2968_p5 }
  0x19   : > { %p2164_p1 = pneg %p2460_p13 }
  0x1b   : > { %p2165_p2 = pnand %p2164_p1, %p2163_p0 }
  0x1d   : > { %p2166_p3 = pneg %p2165_p2 }
  0x1f   : > { %p2171_p7 = pnand %p2169_p6, %p2166_p3 }
  0x21   : > { %2174 = shalt.err (!%p2171_p7)
}
  0x22   : > { %s2175_s8 = scalar_lea.vmem %s218_s16, 1024  ;;  %p2183_p10 = scmp.lt.s32.totalorder %s218_s16, %s218_s16 }
  0x23   : > { %p2176_p9 = scmp.ne.s32.totalorder %s218_s16, %s2175_s8  ;;  %p2184_p8 = scmp.lt.s32.totalorder %s2175_s8, %s2175_s8 }
  0x25   : > { %p2178_p12 = pnand %p2176_p9, %p2164_p1  ;;  %p2185_p11 = por %p2184_p8, %p2183_p10 }
  0x27   : > { %p2179_p5 = pneg %p2178_p12 }
  0x29   : > { %p2186_p4 = pnand %p2185_p11, %p2179_p5 }
  0x2b   : > { %2189 = shalt.err (!%p2186_p4)
}
  0x2c   : > { %s2352_s9 = smov 64   ;;  %s2353_s15 = smov 4  }
  0x2d   : > { %1908 = dma.hbm_to_vmem [thread:$0]  (!%p2460_p13), %s2961_s1, 1024, %s218_s16, [#allocation6], %s2352_s9, %s2352_s9, %s2353_s15  }
  0x2e   : > { %s2190_s23 = scalar_lea.hbm %s2963_s3, 1024 }
  0x2f   : > { %p2191_p0 = scmp.ne.s32.totalorder %s2963_s3, %s2190_s23  ;;  %p2197_p8 = scmp.lt.u32.totalorder %s2190_s23, %s2963_s3 }
  0x31   : > { %p2193_p4 = pnand %p2191_p0, %p2164_p1 }
  0x33   : > { %p2194_p5 = pneg %p2193_p4 }
  0x35   : > { %p2199_p10 = pnand %p2197_p8, %p2194_p5 }
  0x37   : > { %2202 = shalt.err (!%p2199_p10)
}
  0x38   : > { %s2203_s16 = scalar_lea.vmem %s2464_s19, 1024  ;;  %p2211_p6 = scmp.lt.s32.totalorder %s2464_s19, %s2464_s19 }
  0x39   : > { %p2204_p11 = scmp.ne.s32.totalorder %s2464_s19, %s2203_s16  ;;  %p2212_p7 = scmp.lt.s32.totalorder %s2203_s16, %s2203_s16 }
  0x3b   : > { %p2206_p2 = pnand %p2204_p11, %p2164_p1  ;;  %p2213_p9 = por %p2212_p7, %p2211_p6 }
  0x3d   : > { %p2207_p3 = pneg %p2206_p2 }
  0x3f   : > { %p2214_p12 = pnand %p2213_p9, %p2207_p3 }
  0x41   : > { %2217 = shalt.err (!%p2214_p12)
}
  0x42   : > { %1911 = dma.hbm_to_vmem [thread:$0]  (!%p2460_p13), %s2963_s3, 1024, %s2464_s19, [#allocation6], %s2352_s9, %s2352_s9, %s2353_s15  }
  0x43   : > { %p1667_p0 = scmp.ge.s32.totalorder %s2316_s29, 2 }
  0x44   : > { %p2976_p4 = scmp.ne.s32.totalorder (!%p1667_p0), %s2971_s11, 0 }
  0x45   : > { %252 = sbr.rel (%p1667_p0) target bundleno = 111 (0x6f), region = 40 }
  0x4c   : > { %255 = sbr.rel (!%p2976_p4) target bundleno = 111 (0x6f), region = 44  ;;  %s256_s21 = sand.u32 (%p2976_p4), 1, %s2312_s28  }
  0x4d   : > { %s1669_s22 = sshll.u32 (%p2976_p4), %s2316_s29, 5  ;;  %s1668_s23 = sshll.u32 (%p2976_p4), %s256_s21, 8 }
  0x4e   : > { %s262_s24 = ssub.s32 (%p2976_p4), 48, %s1669_s22  ;;  %s2521_s26 = scalar_lea.sflag (%p2976_p4), [#allocation4], %s256_s21 }
  0x4f   : > { %p263_p1 = scmp.lt.s32.totalorder (%p2976_p4), %s262_s24, 32  ;;  %s260_s19 = scalar_lea.vmem (%p2976_p4), [#allocation3], %s1668_s23 }
  0x53   : > { %s2992_s24 = smov (!%p263_p1, %s262_s24), 32 }
  0x54   : > { %s2518_s17 = sshll.u32 %s2992_s24, 7 }
  0x55   : > { %s267_s25 = ssub.s32 4096, %s2518_s17 }
  0x56   : > { %268 = vsyncadd %s2521_s26, %s267_s25  ;;  %p1671_p13 = scmp.ne.s32.totalorder %s2518_s17, 0  ;;  %s1748_s11 = sshll.u32 %s2316_s29, 12 }
  0x57   : > { %s2529_s8 = scalar_lea.hbm %s2960_s0, %s1748_s11  ;;  %s273_s16 = sshll.u32 %s260_s19, 4  ;;  %s2531_s16 = int_to_ptr.vmem [resolvable:$true] %s273_s16 }
  0x58   : > { %s2218_s18 = scalar_lea.hbm %s2529_s8, %s2518_s17  ;;  %s2222_s29 = scalar_lea.hbm %s2960_s0, 6144 }
  0x59   : > { %p2219_p5 = scmp.ne.s32.totalorder %s2529_s8, %s2218_s18  ;;  %p2223_p11 = scmp.lt.u32.totalorder %s2529_s8, %s2960_s0 }
  0x5a   : > { %p2224_p2 = scmp.lt.u32.totalorder %s2222_s29, %s2218_s18  ;;  %p2226_p6 = scmp.lt.u32.totalorder %s2218_s18, %s2529_s8 }
  0x5b   : > { %p2220_p8 = pnand %p2219_p5, %p1671_p13 }
  0x5c   : > { %p2225_p3 = por %p2224_p2, %p2223_p11 }
  0x5d   : > { %p2221_p10 = pneg %p2220_p8 }
  0x5e   : > { %p2227_p7 = por %p2226_p6, %p2225_p3 }
  0x60   : > { %p2228_p9 = pnand %p2227_p7, %p2221_p10 }
  0x62   : > { %2231 = shalt.err (!%p2228_p9)
}
  0x63   : > { %s2232_s24 = scalar_lea.vmem %s2531_s16, %s2518_s17  ;;  %s2354_s25 = smov [#allocation3]  }
  0x64   : > { %p2233_p12 = scmp.ne.s32.totalorder %s2531_s16, %s2232_s24  ;;  %s2236_s19 = sshll.u32 %s2354_s25, 4  ;;  %s2237_s19 = int_to_ptr.vmem [resolvable:$false] %s2236_s19 }
  0x65   : > { %s2238_s11 = scalar_lea.vmem %s2237_s19, 8192  ;;  %p2239_p1 = scmp.lt.s32.totalorder %s2531_s16, %s2237_s19 }
  0x66   : > { %p2234_p0 = pnand %p2233_p12, %p1671_p13  ;;  %p2240_p5 = scmp.lt.s32.totalorder %s2238_s11, %s2232_s24 }
  0x68   : > { %p2235_p4 = pneg %p2234_p0  ;;  %p2241_p8 = por %p2240_p5, %p2239_p1 }
  0x6a   : > { %p2242_p11 = pnand %p2241_p8, %p2235_p4 }
  0x6c   : > { %2245 = shalt.err (!%p2242_p11)
}
  0x6d   : > { %s2355_s9 = smov 128   ;;  %s2356_s15 = smov 8  }
  0x6e   : > { %279 = dma.hbm_to_vmem [thread:$0]  (%p1671_p13), %s2529_s8, %s2518_s17, %s2531_s16, %s2521_s26, %s2355_s9, %s2355_s9, %s2356_s15  }
  0x6f PF: > { %p2977_p10 = scmp.ne.s32.totalorder %s2974_s14, 0 }
  0x70   : > { %s287_s18 = sand.u32 (!%p2977_p10), 1, %s2308_s27   ;;  %p2978_p2 = scmp.ne.s32.totalorder (!%p2977_p10), %s2972_s12, 0 }
  0x71   : > { %285 = sbr.rel (%p2977_p10) target bundleno = 890 (0x37a), region = 48  ;;  %s2561_s20 = sshll.u32 (!%p2977_p10), %s287_s18, 8 }
  0x72   : > { %s288_s21 = scalar_lea.sflag (!%p2977_p10), [#allocation4], %s287_s18  ;;  %s2564_s29 = scalar_lea.vmem (!%p2977_p10), [#allocation3], %s2561_s20 }
  0x78   : > { %2295 = dma.done.wait (%p2978_p2), %s288_s21, 4096  }
  0x79   : > { %2297 = vsyncadd (%p2978_p2), %s288_s21, 4294963200  ;;  %p2979_p13 = scmp.eq.s32.totalorder %s2419_s6, 0 }
  0x7b   : > { %2299 = dma.done.wait (%p2979_p13), [#allocation6], 2048   ;;  %p2980_p3 = pmov %p2979_p13 }
  0x7c   : > { %v2018_v0 = vld [vmem:[#allocation5] sm:$0xff]   ;;  %v2019_v1 = vld [vmem:[#allocation5 + $0x8] sm:$0xff]   ;;  %v2020_v2 = vld [vmem:[#allocation5 + $0x10] sm:$0xff]   ;;  %s1035_s22 = sld [smem:[#allocation2]]  ;;  %vm1261_vm0 = vcmask 7168   ;;  %s2734_s23 = scalar_lea.vmem [#allocation8], %s2561_s20  }
  0x7d   : > { %2301 = vsyncadd (%p2980_p3), [#allocation6], 4294965248  ;;  %1800 = vmatprep.subr.bf16.mxu0 %v2018_v0  ;;  %v2021_v3 = vld [vmem:[#allocation5 + $0x18] sm:$0xff]   ;;  %v340_v4 = vld [vmem:[%s2564_s29] sm:$0xff]  ;;  %p2981_p6 = scmp.ne.s32.totalorder %s2973_s13, 0 }
  0x7e   : > { %1801 = vmatpush3.bf16.msra.mxu0 %v2018_v0  ;;  %v341_v5 = vld [vmem:[%s2564_s29 + $0x8] sm:$0xff]  ;;  %v2022_v7 = vld [vmem:[#allocation5 + $0x20] sm:$0xff]   ;;  %v2024_v9 = vld [vmem:[#allocation5 + $0x30] sm:$0xff]   ;;  %s1732_s24 = sshll.u32 (%p2981_p6), %s2419_s6, 5  ;;  %s1749_s25 = sshll.u32 (%p2981_p6), %s2419_s6, 8 }
  0x7f   : > { %1802 = vmatprep.subr.bf16.mxu0 %v2019_v1  ;;  %v372_v6 = vpack.c.bf16 %v341_v5, %v340_v4  ;;  %v2023_v8 = vld [vmem:[#allocation5 + $0x28] sm:$0xff]   ;;  %v2026_v10 = vld [vmem:[#allocation7] sm:$0xff]   ;;  %v2028_v12 = vld [vmem:[#allocation7 + $0x10] sm:$0xff]   ;;  %s1302_s19 = ssub.s32 (%p2981_p6), 48, %s1732_s24  ;;  %s2825_s15 = scalar_lea.vmem (%p2981_p6), %s2967_s7, %s1749_s25  }
  0x80   : > { %v2027_v11 = vld [vmem:[#allocation7 + $0x8] sm:$0xff]   ;;  %1848 = vmatprep.subr.bf16.mxu1 %v2026_v10  ;;  %v2025_v13 = vld [vmem:[#allocation5 + $0x38] sm:$0xff]   ;;  %v342_v14 = vld [vmem:[%s2564_s29 + $0x10] sm:$0xff]  ;;  %p1303_p7 = scmp.lt.s32.totalorder (%p2981_p6), %s1302_s19, 32 }
  0x81   : > { %1816 = vmatprep.mubr.bf16.mxu0 %v372_v6  ;;  %1849 = vmatpush3.bf16.msra.mxu1 %v2026_v10  ;;  %v343_v15 = vld [vmem:[%s2564_s29 + $0x18] sm:$0xff]  ;;  %v344_v17 = vld [vmem:[%s2564_s29 + $0x20] sm:$0xff]  ;;  %v345_v18 = vld [vmem:[%s2564_s29 + $0x28] sm:$0xff] }
  0x82   : > { %1803 = vmatpush3.bf16.msra.mxu0 %v2019_v1  ;;  %1850 = vmatprep.subr.bf16.mxu1 %v2027_v11  ;;  %v2029_v16 = vld [vmem:[#allocation7 + $0x18] sm:$0xff]   ;;  %v373_v19 = vpack.c.bf16 %v343_v15, %v342_v14  ;;  %v374_v20 = vpack.c.bf16 %v345_v18, %v344_v17  ;;  %v2030_v21 = vld [vmem:[#allocation7 + $0x20] sm:$0xff]   ;;  %v346_v22 = vld [vmem:[%s2564_s29 + $0x30] sm:$0xff] }
  0x83   : > { %1804 = vmatprep.subr.bf16.mxu0 %v2020_v2  ;;  %v347_v23 = vld [vmem:[%s2564_s29 + $0x38] sm:$0xff]  ;;  %v2031_v24 = vld [vmem:[#allocation7 + $0x28] sm:$0xff]   ;;  %v348_v25 = vld [vmem:[%s2564_s29 + $0x40] sm:$0xff] }
  0x84   : > { %v349_v26 = vld [vmem:[%s2564_s29 + $0x48] sm:$0xff]  ;;  %v375_v27 = vpack.c.bf16 %v347_v23, %v346_v22  ;;  %v350_v29 = vld [vmem:[%s2564_s29 + $0x50] sm:$0xff]  ;;  %v351_v30 = vld [vmem:[%s2564_s29 + $0x58] sm:$0xff] }
  0x85   : > { %1851 = vmatpush3.bf16.msra.mxu1 %v2027_v11  ;;  %v376_v28 = vpack.c.bf16 %v349_v26, %v348_v25  ;;  %v352_v31 = vld [vmem:[%s2564_s29 + $0x60] sm:$0xff]  ;;  %v353_v32 = vld [vmem:[%s2564_s29 + $0x68] sm:$0xff]  ;;  %v377_v33 = vpack.c.bf16 %v351_v30, %v350_v29  ;;  %v354_v35 = vld [vmem:[%s2564_s29 + $0x70] sm:$0xff] }
  0x86   : > { %1805 = vmatpush3.bf16.msra.mxu0 %v2020_v2  ;;  %1852 = vmatprep.subr.bf16.mxu1 %v2028_v12  ;;  %v378_v34 = vpack.c.bf16 %v353_v32, %v352_v31  ;;  %v355_v36 = vld [vmem:[%s2564_s29 + $0x78] sm:$0xff]  ;;  %v356_v37 = vld [vmem:[%s2564_s29 + $0x80] sm:$0xff]  ;;  %v357_v38 = vld [vmem:[%s2564_s29 + $0x88] sm:$0xff] }
  0x87   : > { %1806 = vmatprep.subr.bf16.mxu0 %v2021_v3  ;;  %v379_v39 = vpack.c.bf16 %v355_v36, %v354_v35  ;;  %v380_v40 = vpack.c.bf16 %v357_v38, %v356_v37  ;;  %v358_v41 = vld [vmem:[%s2564_s29 + $0x90] sm:$0xff]  ;;  %v359_v42 = vld [vmem:[%s2564_s29 + $0x98] sm:$0xff]  ;;  %v360_v43 = vld [vmem:[%s2564_s29 + $0xa0] sm:$0xff] }
  0x88   : > { %v361_v44 = vld [vmem:[%s2564_s29 + $0xa8] sm:$0xff]  ;;  %v381_v45 = vpack.c.bf16 %v359_v42, %v358_v41  ;;  %v362_v47 = vld [vmem:[%s2564_s29 + $0xb0] sm:$0xff]  ;;  %v363_v48 = vld [vmem:[%s2564_s29 + $0xb8] sm:$0xff] }
  0x89   : > { %1853 = vmatpush3.bf16.msra.mxu1 %v2028_v12  ;;  %v382_v46 = vpack.c.bf16 %v361_v44, %v360_v43  ;;  %v364_v49 = vld [vmem:[%s2564_s29 + $0xc0] sm:$0xff]  ;;  %v365_v50 = vld [vmem:[%s2564_s29 + $0xc8] sm:$0xff]  ;;  %v383_v51 = vpack.c.bf16 %v363_v48, %v362_v47  ;;  %v366_v53 = vld [vmem:[%s2564_s29 + $0xd0] sm:$0xff] }
  0x8a   : > { %1807 = vmatpush3.bf16.msra.mxu0 %v2021_v3  ;;  %1854 = vmatprep.subr.bf16.mxu1 %v2029_v16  ;;  %v384_v52 = vpack.c.bf16 %v365_v50, %v364_v49  ;;  %v367_v54 = vld [vmem:[%s2564_s29 + $0xd8] sm:$0xff]  ;;  %v368_v55 = vld [vmem:[%s2564_s29 + $0xe0] sm:$0xff]  ;;  %v369_v56 = vld [vmem:[%s2564_s29 + $0xe8] sm:$0xff] }
  0x8b   : > { %1808 = vmatprep.subr.bf16.mxu0 %v2022_v7  ;;  %v385_v57 = vpack.c.bf16 %v367_v54, %v366_v53  ;;  %v386_v58 = vpack.c.bf16 %v369_v56, %v368_v55  ;;  %v370_v59 = vld [vmem:[%s2564_s29 + $0xf0] sm:$0xff]  ;;  %v371_v60 = vld [vmem:[%s2564_s29 + $0xf8] sm:$0xff]  ;;  %v2609_v0 = vld [vmem:[%s2962_s2] ss:$0 sm:$0xff] }
  0x8c   : > { %v387_v61 = vpack.c.bf16 %v371_v60, %v370_v59  ;;  %v2032_v62 = vld [vmem:[#allocation7 + $0x30] sm:$0xff]   ;;  %v2033_v63 = vld [vmem:[#allocation7 + $0x38] sm:$0xff]  }
  0x8d   : > { %1855 = vmatpush3.bf16.msra.mxu1 %v2029_v16 }
  0x8e   : > { %1809 = vmatpush3.bf16.msra.mxu0 %v2022_v7  ;;  %1856 = vmatprep.subr.bf16.mxu1 %v2030_v21 }
  0x8f   : > { %1810 = vmatprep.subr.bf16.mxu0 %v2023_v8 }
  0x91   : > { %1857 = vmatpush3.bf16.msra.mxu1 %v2030_v21 }
  0x92   : > { %1811 = vmatpush3.bf16.msra.mxu0 %v2023_v8  ;;  %1858 = vmatprep.subr.bf16.mxu1 %v2031_v24 }
  0x93   : > { %1812 = vmatprep.subr.bf16.mxu0 %v2024_v9 }
  0x95   : > { %1859 = vmatpush3.bf16.msra.mxu1 %v2031_v24 }
  0x96   : > { %1813 = vmatpush3.bf16.msra.mxu0 %v2024_v9  ;;  %1860 = vmatprep.subr.bf16.mxu1 %v2032_v62 }
  0x97   : > { %1814 = vmatprep.subr.bf16.mxu0 %v2025_v13 }
  0x99   : > { %1861 = vmatpush3.bf16.msra.mxu1 %v2032_v62 }
  0x9a   : > { %1815 = vmatpush3.bf16.msra.mxu0 %v2025_v13  ;;  %1862 = vmatprep.subr.bf16.mxu1 %v2033_v63 }
  0x9d   : > { %1817 = vmatmul.mubr.bf16.vlgmr.msra.gmra.mrb[0].mxu0 %v373_v19  ;;  %1863 = vmatpush3.bf16.msra.mxu1 %v2033_v63 }
  0x9e   : > { %1820 = vmatprep.mubr.bf16.mxu0 %v374_v20 }
  0xa5   : > { %1821 = vmatmul.mubr.bf16.gmra.mrb[4].mxu0 %v375_v27 }
  0xa6   : > { %1824 = vmatprep.mubr.bf16.mxu0 %v376_v28 }
  0xad   : > { %1825 = vmatmul.mubr.bf16.gmra.mrb[8].mxu0 %v377_v33 }
  0xae   : > { %1828 = vmatprep.mubr.bf16.mxu0 %v378_v34 }
  0xb5   : > { %1829 = vmatmul.mubr.bf16.gmra.mrb[12].mxu0 %v379_v39 }
  0xb6   : > { %1832 = vmatprep.mubr.bf16.mxu0 %v380_v40 }
  0xbd   : > { %1833 = vmatmul.mubr.bf16.gmra.mrb[16].mxu0 %v381_v45 }
  0xbe   : > { %1836 = vmatprep.mubr.bf16.mxu0 %v382_v46 }
  0xc5   : > { %1837 = vmatmul.mubr.bf16.gmra.mrb[20].mxu0 %v383_v51 }
  0xc6   : > { %1840 = vmatprep.mubr.bf16.mxu0 %v384_v52 }
  0xcd   : > { %1841 = vmatmul.mubr.bf16.gmra.mrb[24].mxu0 %v385_v57 }
  0xce   : > { %1844 = vmatprep.mubr.bf16.mxu0 %v386_v58 }
  0xd5   : > { %1845 = vmatmul.mubr.bf16.gmra.mrb[28].mxu0 %v387_v61 }
 0x170   : > { %v1818_v1 = vpop.f32.mrb[0].mxu0 }
 0x171   : > { %v502_v2 = vadd.f32 %v1818_v1, %v2609_v0  ;;  %v493_v3 = vpop.f32.mrb[1].mxu0 }
 0x172   : > { %v494_v4 = vadd.f32 %v2609_v0, %v493_v3  ;;  %v1819_v5 = vpop.f32.mrb[2].mxu0 }
 0x173   : > { %v505_v6 = vadd.f32 %v1819_v5, %v2609_v0  ;;  %v496_v7 = vpop.f32.mrb[3].mxu0  ;;  %v622_v9 = vmax.f32 %v502_v2, 0.0 }
 0x174   : > { %v497_v8 = vadd.f32 %v2609_v0, %v496_v7  ;;  %v620_v11 = vmax.f32 %v494_v4, 0.0 }
 0x175   : > { %v623_v10 = vmax.f32 %v505_v6, 0.0 }
 0x176   : > { %v621_v12 = vmax.f32 %v497_v8, 0.0 }
 0x177   : > { %v653_v13 = vpack.c.bf16 %v623_v10, %v622_v9 }
 0x178   : > { %v1822_v14 = vpop.f32.mrb[4].mxu0  ;;  %v652_v15 = vpack.c.bf16 %v621_v12, %v620_v11 }
 0x179   : > { %v518_v16 = vadd.f32 %v1822_v14, %v2609_v0  ;;  %v509_v17 = vpop.f32.mrb[5].mxu0 }
 0x17a   : > { %v510_v18 = vadd.f32 %v2609_v0, %v509_v17  ;;  %v1823_v19 = vpop.f32.mrb[6].mxu0  ;;  %1864 = vmatprep.mubr.bf16.mxu1 %v652_v15 }
 0x17b   : > { %v521_v20 = vadd.f32 %v1823_v19, %v2609_v0  ;;  %v512_v21 = vpop.f32.mrb[7].mxu0  ;;  %1865 = vmatmul.mubr.bf16.vlgmr.msra.gmra.mrb[0].mxu1 %v653_v13  ;;  %v626_v23 = vmax.f32 %v518_v16, 0.0 }
 0x17c   : > { %v513_v22 = vadd.f32 %v2609_v0, %v512_v21  ;;  %v624_v25 = vmax.f32 %v510_v18, 0.0 }
 0x17d   : > { %v627_v24 = vmax.f32 %v521_v20, 0.0 }
 0x17e   : > { %v625_v26 = vmax.f32 %v513_v22, 0.0 }
 0x17f   : > { %v655_v27 = vpack.c.bf16 %v627_v24, %v626_v23 }
 0x180   : > { %v654_v28 = vpack.c.bf16 %v625_v26, %v624_v25  ;;  %v1826_v29 = vpop.f32.mrb[8].mxu0 }
 0x181   : > { %v534_v30 = vadd.f32 %v1826_v29, %v2609_v0  ;;  %v525_v31 = vpop.f32.mrb[9].mxu0 }
 0x182   : > { %v526_v32 = vadd.f32 %v2609_v0, %v525_v31  ;;  %v1827_v33 = vpop.f32.mrb[10].mxu0  ;;  %1868 = vmatprep.mubr.bf16.mxu1 %v654_v28 }
 0x183   : > { %v537_v34 = vadd.f32 %v1827_v33, %v2609_v0  ;;  %v528_v35 = vpop.f32.mrb[11].mxu0  ;;  %1869 = vmatmul.mubr.bf16.gmra.mrb[4].mxu1 %v655_v27  ;;  %v630_v37 = vmax.f32 %v534_v30, 0.0 }
 0x184   : > { %v529_v36 = vadd.f32 %v2609_v0, %v528_v35  ;;  %v628_v39 = vmax.f32 %v526_v32, 0.0 }
 0x185   : > { %v631_v38 = vmax.f32 %v537_v34, 0.0 }
 0x186   : > { %v629_v40 = vmax.f32 %v529_v36, 0.0 }
 0x187   : > { %v657_v41 = vpack.c.bf16 %v631_v38, %v630_v37 }
 0x188   : > { %v656_v42 = vpack.c.bf16 %v629_v40, %v628_v39  ;;  %v1830_v43 = vpop.f32.mrb[12].mxu0 }
 0x189   : > { %v550_v44 = vadd.f32 %v1830_v43, %v2609_v0  ;;  %v541_v45 = vpop.f32.mrb[13].mxu0 }
 0x18a   : > { %v542_v46 = vadd.f32 %v2609_v0, %v541_v45  ;;  %v1831_v47 = vpop.f32.mrb[14].mxu0  ;;  %1872 = vmatprep.mubr.bf16.mxu1 %v656_v42 }
 0x18b   : > { %v553_v48 = vadd.f32 %v1831_v47, %v2609_v0  ;;  %v544_v49 = vpop.f32.mrb[15].mxu0  ;;  %1873 = vmatmul.mubr.bf16.gmra.mrb[8].mxu1 %v657_v41  ;;  %v634_v51 = vmax.f32 %v550_v44, 0.0 }
 0x18c   : > { %v545_v50 = vadd.f32 %v2609_v0, %v544_v49  ;;  %v632_v53 = vmax.f32 %v542_v46, 0.0 }
 0x18d   : > { %v635_v52 = vmax.f32 %v553_v48, 0.0 }
 0x18e   : > { %v633_v54 = vmax.f32 %v545_v50, 0.0  ;;  %v2646_v50 = vld [vmem:[%s2964_s4] ss:$0 sm:$0xff] }
 0x18f   : > { %v659_v55 = vpack.c.bf16 %v635_v52, %v634_v51 }
 0x190   : > { %v658_v56 = vpack.c.bf16 %v633_v54, %v632_v53  ;;  %v1834_v57 = vpop.f32.mrb[16].mxu0 }
 0x191   : > { %v566_v58 = vadd.f32 %v1834_v57, %v2609_v0  ;;  %v557_v59 = vpop.f32.mrb[17].mxu0 }
 0x192   : > { %v558_v60 = vadd.f32 %v2609_v0, %v557_v59  ;;  %v1835_v61 = vpop.f32.mrb[18].mxu0  ;;  %1876 = vmatprep.mubr.bf16.mxu1 %v658_v56 }
 0x193   : > { %v569_v62 = vadd.f32 %v1835_v61, %v2609_v0  ;;  %v560_v63 = vpop.f32.mrb[19].mxu0  ;;  %1877 = vmatmul.mubr.bf16.gmra.mrb[12].mxu1 %v659_v55  ;;  %v638_v2 = vmax.f32 %v566_v58, 0.0  ;;  %v2653_v55 = vld [vmem:[%s2965_s5] ss:$0 sm:$0xff] }
 0x194   : > { %v561_v1 = vadd.f32 %v2609_v0, %v560_v63  ;;  %v636_v4 = vmax.f32 %v558_v60, 0.0 }
 0x195   : > { %v639_v3 = vmax.f32 %v569_v62, 0.0 }
 0x196   : > { %v637_v5 = vmax.f32 %v561_v1, 0.0 }
 0x197   : > { %v661_v6 = vpack.c.bf16 %v639_v3, %v638_v2 }
 0x198   : > { %v660_v7 = vpack.c.bf16 %v637_v5, %v636_v4  ;;  %v1838_v8 = vpop.f32.mrb[20].mxu0 }
 0x199   : > { %v582_v9 = vadd.f32 %v1838_v8, %v2609_v0  ;;  %v573_v10 = vpop.f32.mrb[21].mxu0 }
 0x19a   : > { %v574_v11 = vadd.f32 %v2609_v0, %v573_v10  ;;  %v1839_v12 = vpop.f32.mrb[22].mxu0  ;;  %1880 = vmatprep.mubr.bf16.mxu1 %v660_v7 }
 0x19b   : > { %v585_v13 = vadd.f32 %v1839_v12, %v2609_v0  ;;  %v576_v14 = vpop.f32.mrb[23].mxu0  ;;  %1881 = vmatmul.mubr.bf16.gmra.mrb[16].mxu1 %v661_v6  ;;  %v642_v16 = vmax.f32 %v582_v9, 0.0 }
 0x19c   : > { %v577_v15 = vadd.f32 %v2609_v0, %v576_v14  ;;  %v640_v18 = vmax.f32 %v574_v11, 0.0 }
 0x19d   : > { %v643_v17 = vmax.f32 %v585_v13, 0.0 }
 0x19e   : > { %v641_v19 = vmax.f32 %v577_v15, 0.0 }
 0x19f   : > { %v663_v20 = vpack.c.bf16 %v643_v17, %v642_v16 }
 0x1a0   : > { %v662_v21 = vpack.c.bf16 %v641_v19, %v640_v18  ;;  %v1842_v22 = vpop.f32.mrb[24].mxu0 }
 0x1a1   : > { %v598_v23 = vadd.f32 %v1842_v22, %v2609_v0  ;;  %v589_v24 = vpop.f32.mrb[25].mxu0 }
 0x1a2   : > { %v590_v25 = vadd.f32 %v2609_v0, %v589_v24  ;;  %v1843_v26 = vpop.f32.mrb[26].mxu0  ;;  %1884 = vmatprep.mubr.bf16.mxu1 %v662_v21 }
 0x1a3   : > { %v601_v27 = vadd.f32 %v1843_v26, %v2609_v0  ;;  %v592_v28 = vpop.f32.mrb[27].mxu0  ;;  %1885 = vmatmul.mubr.bf16.gmra.mrb[20].mxu1 %v663_v20  ;;  %v646_v30 = vmax.f32 %v598_v23, 0.0 }
 0x1a4   : > { %v593_v29 = vadd.f32 %v2609_v0, %v592_v28  ;;  %v644_v32 = vmax.f32 %v590_v25, 0.0 }
 0x1a5   : > { %v647_v31 = vmax.f32 %v601_v27, 0.0 }
 0x1a6   : > { %v645_v33 = vmax.f32 %v593_v29, 0.0 }
 0x1a7   : > { %v665_v34 = vpack.c.bf16 %v647_v31, %v646_v30 }
 0x1a8   : > { %v664_v35 = vpack.c.bf16 %v645_v33, %v644_v32  ;;  %v1846_v36 = vpop.f32.mrb[28].mxu0 }
 0x1a9   : > { %v614_v37 = vadd.f32 %v1846_v36, %v2609_v0  ;;  %v605_v38 = vpop.f32.mrb[29].mxu0 }
 0x1aa   : > { %v606_v39 = vadd.f32 %v2609_v0, %v605_v38  ;;  %v1847_v40 = vpop.f32.mrb[30].mxu0  ;;  %1888 = vmatprep.mubr.bf16.mxu1 %v664_v35 }
 0x1ab   : > { %v617_v41 = vadd.f32 %v1847_v40, %v2609_v0  ;;  %v608_v42 = vpop.f32.mrb[31].mxu0  ;;  %1889 = vmatmul.mubr.bf16.gmra.mrb[24].mxu1 %v665_v34  ;;  %v650_v44 = vmax.f32 %v614_v37, 0.0 }
 0x1ac   : > { %v609_v43 = vadd.f32 %v2609_v0, %v608_v42  ;;  %v648_v46 = vmax.f32 %v606_v39, 0.0 }
 0x1ad   : > { %v651_v45 = vmax.f32 %v617_v41, 0.0 }
 0x1ae   : > { %v649_v47 = vmax.f32 %v609_v43, 0.0 }
 0x1af   : > { %v667_v48 = vpack.c.bf16 %v651_v45, %v650_v44 }
 0x1b0   : > { %v666_v49 = vpack.c.bf16 %v649_v47, %v648_v46 }
 0x1b2   : > { %1892 = vmatprep.mubr.bf16.mxu1 %v666_v49 }
 0x1b3   : > { %1893 = vmatmul.mubr.bf16.gmra.mrb[28].mxu1 %v667_v48 }
 0x24e   : > { %v1866_v51 = vpop.f32.mrb[0].mxu1 }
 0x24f   : > { %v782_v52 = vadd.f32 %v1866_v51, %v2646_v50  ;;  %v773_v53 = vpop.f32.mrb[1].mxu1 }
 0x250   : > { %v774_v54 = vadd.f32 %v2646_v50, %v773_v53  ;;  %v1867_v0 = vpop.f32.mrb[2].mxu1 }
 0x251   : > { %v902_v56 = vmax.f32 %v782_v52, 0.0  ;;  %v785_v57 = vadd.f32 %v1867_v0, %v2646_v50  ;;  %v776_v58 = vpop.f32.mrb[3].mxu1 }
 0x252   : > { %v900_v59 = vmax.f32 %v774_v54, 0.0  ;;  %v777_v60 = vadd.f32 %v2646_v50, %v776_v58 }
 0x253   : > { %v903_v61 = vmax.f32 %v785_v57, 0.0  ;;  %v941_v62 = vmul.f32 %v2653_v55, %v902_v56 }
 0x254   : > { %v901_v63 = vmax.f32 %v777_v60, 0.0  ;;  %v939_v1 = vmul.f32 %v2653_v55, %v900_v59 }
 0x255   : > { %975 = vadd.xlane.f32.xlu1 %v941_v62  ;;  %v942_v5 = vmul.f32 %v2653_v55, %v903_v61 }
 0x256   : > { %v1870_v2 = vpop.f32.mrb[4].mxu1  ;;  %971 = vadd.xlane.f32.xlu0 %v939_v1  ;;  %v940_v8 = vmul.f32 %v2653_v55, %v901_v63 }
 0x257   : > { %v798_v3 = vadd.f32 %v1870_v2, %v2646_v50  ;;  %v789_v4 = vpop.f32.mrb[5].mxu1 }
 0x258   : > { %v790_v6 = vadd.f32 %v2646_v50, %v789_v4  ;;  %v1871_v7 = vpop.f32.mrb[6].mxu1 }
 0x259   : > { %v906_v9 = vmax.f32 %v798_v3, 0.0  ;;  %v801_v10 = vadd.f32 %v1871_v7, %v2646_v50  ;;  %977 = vadd.xlane.f32.xlu1 %v942_v5  ;;  %v792_v11 = vpop.f32.mrb[7].mxu1 }
 0x25a   : > { %v793_v12 = vadd.f32 %v2646_v50, %v792_v11  ;;  %973 = vadd.xlane.f32.xlu0 %v940_v8  ;;  %v904_v15 = vmax.f32 %v790_v6, 0.0 }
 0x25b   : > { %v907_v13 = vmax.f32 %v801_v10, 0.0  ;;  %v945_v14 = vmul.f32 %v2653_v55, %v906_v9 }
 0x25c   : > { %v905_v16 = vmax.f32 %v793_v12, 0.0  ;;  %v943_v23 = vmul.f32 %v2653_v55, %v904_v15 }
 0x25d   : > { %v946_v17 = vmul.f32 %v2653_v55, %v907_v13 }
 0x25e   : > { %v1874_v18 = vpop.f32.mrb[8].mxu1  ;;  %983 = vadd.xlane.f32.xlu0 %v945_v14  ;;  %v944_v27 = vmul.f32 %v2653_v55, %v905_v16 }
 0x25f   : > { %v814_v19 = vadd.f32 %v1874_v18, %v2646_v50  ;;  %985 = vadd.xlane.f32.xlu1 %v946_v17  ;;  %v805_v20 = vpop.f32.mrb[9].mxu1 }
 0x260   : > { %v806_v21 = vadd.f32 %v2646_v50, %v805_v20  ;;  %v1875_v22 = vpop.f32.mrb[10].mxu1 }
 0x261   : > { %v910_v24 = vmax.f32 %v814_v19, 0.0  ;;  %v817_v25 = vadd.f32 %v1875_v22, %v2646_v50  ;;  %v808_v26 = vpop.f32.mrb[11].mxu1 }
 0x262   : > { %v809_v28 = vadd.f32 %v2646_v50, %v808_v26  ;;  %979 = vadd.xlane.f32.xlu0 %v943_v23  ;;  %v908_v31 = vmax.f32 %v806_v21, 0.0 }
 0x263   : > { %v911_v29 = vmax.f32 %v817_v25, 0.0  ;;  %981 = vadd.xlane.f32.xlu1 %v944_v27  ;;  %v949_v30 = vmul.f32 %v2653_v55, %v910_v24 }
 0x264   : > { %v909_v32 = vmax.f32 %v809_v28, 0.0  ;;  %v947_v39 = vmul.f32 %v2653_v55, %v908_v31 }
 0x265   : > { %v950_v33 = vmul.f32 %v2653_v55, %v911_v29 }
 0x266   : > { %v1878_v34 = vpop.f32.mrb[12].mxu1  ;;  %991 = vadd.xlane.f32.xlu0 %v949_v30  ;;  %v948_v43 = vmul.f32 %v2653_v55, %v909_v32 }
 0x267   : > { %v830_v35 = vadd.f32 %v1878_v34, %v2646_v50  ;;  %v821_v36 = vpop.f32.mrb[13].mxu1  ;;  %993 = vadd.xlane.f32.xlu1 %v950_v33 }
 0x268   : > { %v822_v37 = vadd.f32 %v2646_v50, %v821_v36  ;;  %v1879_v38 = vpop.f32.mrb[14].mxu1 }
 0x269   : > { %v914_v40 = vmax.f32 %v830_v35, 0.0  ;;  %v833_v41 = vadd.f32 %v1879_v38, %v2646_v50  ;;  %v824_v42 = vpop.f32.mrb[15].mxu1 }
 0x26a   : > { %v825_v44 = vadd.f32 %v2646_v50, %v824_v42  ;;  %987 = vadd.xlane.f32.xlu0 %v947_v39  ;;  %v912_v47 = vmax.f32 %v822_v37, 0.0 }
 0x26b   : > { %v915_v45 = vmax.f32 %v833_v41, 0.0  ;;  %989 = vadd.xlane.f32.xlu1 %v948_v43  ;;  %v953_v46 = vmul.f32 %v2653_v55, %v914_v40 }
 0x26c   : > { %v913_v48 = vmax.f32 %v825_v44, 0.0  ;;  %v951_v56 = vmul.f32 %v2653_v55, %v912_v47 }
 0x26d   : > { %v954_v49 = vmul.f32 %v2653_v55, %v915_v45 }
 0x26e   : > { %v1882_v51 = vpop.f32.mrb[16].mxu1  ;;  %999 = vadd.xlane.f32.xlu0 %v953_v46  ;;  %v952_v60 = vmul.f32 %v2653_v55, %v913_v48 }
 0x26f   : > { %v846_v52 = vadd.f32 %v1882_v51, %v2646_v50  ;;  %v837_v53 = vpop.f32.mrb[17].mxu1  ;;  %1001 = vadd.xlane.f32.xlu1 %v954_v49 }
 0x270   : > { %v838_v54 = vadd.f32 %v2646_v50, %v837_v53  ;;  %v1883_v0 = vpop.f32.mrb[18].mxu1 }
 0x271   : > { %v918_v57 = vmax.f32 %v846_v52, 0.0  ;;  %v849_v58 = vadd.f32 %v1883_v0, %v2646_v50  ;;  %v840_v59 = vpop.f32.mrb[19].mxu1  ;;  %v2717_v0 = vstv %s1035_s22 }
 0x272   : > { %v841_v61 = vadd.f32 %v2646_v50, %v840_v59  ;;  %995 = vadd.xlane.f32.xlu0 %v951_v56  ;;  %v916_v1 = vmax.f32 %v838_v54, 0.0 }
 0x273   : > { %v919_v62 = vmax.f32 %v849_v58, 0.0  ;;  %997 = vadd.xlane.f32.xlu1 %v952_v60  ;;  %v957_v63 = vmul.f32 %v2653_v55, %v918_v57 }
 0x274   : > { %v917_v2 = vmax.f32 %v841_v61, 0.0  ;;  %v955_v9 = vmul.f32 %v2653_v55, %v916_v1 }
 0x275   : > { %v958_v3 = vmul.f32 %v2653_v55, %v919_v62 }
 0x276   : > { %v1886_v4 = vpop.f32.mrb[20].mxu1  ;;  %1007 = vadd.xlane.f32.xlu0 %v957_v63  ;;  %v956_v13 = vmul.f32 %v2653_v55, %v917_v2 }
 0x277   : > { %v862_v5 = vadd.f32 %v1886_v4, %v2646_v50  ;;  %v853_v6 = vpop.f32.mrb[21].mxu1  ;;  %1009 = vadd.xlane.f32.xlu1 %v958_v3 }
 0x278   : > { %v854_v7 = vadd.f32 %v2646_v50, %v853_v6  ;;  %v1887_v8 = vpop.f32.mrb[22].mxu1 }
 0x279   : > { %v922_v10 = vmax.f32 %v862_v5, 0.0  ;;  %v865_v11 = vadd.f32 %v1887_v8, %v2646_v50  ;;  %v856_v12 = vpop.f32.mrb[23].mxu1 }
 0x27a   : > { %v857_v14 = vadd.f32 %v2646_v50, %v856_v12  ;;  %1003 = vadd.xlane.f32.xlu0 %v955_v9  ;;  %v920_v17 = vmax.f32 %v854_v7, 0.0 }
 0x27b   : > { %v923_v15 = vmax.f32 %v865_v11, 0.0  ;;  %1005 = vadd.xlane.f32.xlu1 %v956_v13  ;;  %v961_v16 = vmul.f32 %v2653_v55, %v922_v10 }
 0x27c   : > { %v921_v18 = vmax.f32 %v857_v14, 0.0  ;;  %v959_v25 = vmul.f32 %v2653_v55, %v920_v17 }
 0x27d   : > { %v962_v19 = vmul.f32 %v2653_v55, %v923_v15 }
 0x27e   : > { %v1890_v20 = vpop.f32.mrb[24].mxu1  ;;  %1015 = vadd.xlane.f32.xlu0 %v961_v16  ;;  %v960_v29 = vmul.f32 %v2653_v55, %v921_v18 }
 0x27f   : > { %v878_v21 = vadd.f32 %v1890_v20, %v2646_v50  ;;  %v869_v22 = vpop.f32.mrb[25].mxu1  ;;  %1017 = vadd.xlane.f32.xlu1 %v962_v19 }
 0x280   : > { %v870_v23 = vadd.f32 %v2646_v50, %v869_v22  ;;  %v1891_v24 = vpop.f32.mrb[26].mxu1 }
 0x281   : > { %v926_v26 = vmax.f32 %v878_v21, 0.0  ;;  %v881_v27 = vadd.f32 %v1891_v24, %v2646_v50  ;;  %v872_v28 = vpop.f32.mrb[27].mxu1 }
 0x282   : > { %v873_v30 = vadd.f32 %v2646_v50, %v872_v28  ;;  %1011 = vadd.xlane.f32.xlu0 %v959_v25  ;;  %v924_v33 = vmax.f32 %v870_v23, 0.0 }
 0x283   : > { %v927_v31 = vmax.f32 %v881_v27, 0.0  ;;  %1013 = vadd.xlane.f32.xlu1 %v960_v29  ;;  %v965_v32 = vmul.f32 %v2653_v55, %v926_v26 }
 0x284   : > { %v925_v34 = vmax.f32 %v873_v30, 0.0  ;;  %v963_v41 = vmul.f32 %v2653_v55, %v924_v33 }
 0x285   : > { %v966_v35 = vmul.f32 %v2653_v55, %v927_v31 }
 0x286   : > { %v1894_v36 = vpop.f32.mrb[28].mxu1  ;;  %1023 = vadd.xlane.f32.xlu0 %v965_v32  ;;  %v964_v43 = vmul.f32 %v2653_v55, %v925_v34 }
 0x287   : > { %v885_v37 = vpop.f32.mrb[29].mxu1  ;;  %1025 = vadd.xlane.f32.xlu1 %v966_v35  ;;  %v894_v38 = vadd.f32 %v1894_v36, %v2646_v50 }
 0x288   : > { %v886_v39 = vadd.f32 %v2646_v50, %v885_v37  ;;  %v1895_v40 = vpop.f32.mrb[30].mxu1 }
 0x289   : > { %v888_v42 = vpop.f32.mrb[31].mxu1  ;;  %v897_v45 = vadd.f32 %v1895_v40, %v2646_v50  ;;  %v930_v47 = vmax.f32 %v894_v38, 0.0 }
 0x28a   : > { %v928_v44 = vmax.f32 %v886_v39, 0.0  ;;  %v889_v46 = vadd.f32 %v2646_v50, %v888_v42  ;;  %1019 = vadd.xlane.f32.xlu0 %v963_v41 }
 0x28b   : > { %1021 = vadd.xlane.f32.xlu1 %v964_v43  ;;  %v931_v51 = vmax.f32 %v897_v45, 0.0  ;;  %v969_v53 = vmul.f32 %v2653_v55, %v930_v47 }
 0x28c   : > { %v929_v48 = vmax.f32 %v889_v46, 0.0  ;;  %v967_v49 = vmul.f32 %v2653_v55, %v928_v44 }
 0x28d   : > { %v970_v54 = vmul.f32 %v2653_v55, %v931_v51 }
 0x28e   : > { %1027 = vadd.xlane.f32.xlu0 %v967_v49  ;;  %v968_v52 = vmul.f32 %v2653_v55, %v929_v48 }
 0x290   : > { %1029 = vadd.xlane.f32.xlu1 %v968_v52 }
 0x292   : > { %1031 = vadd.xlane.f32.xlu0 %v969_v53 }
 0x294   : > { %1033 = vadd.xlane.f32.xlu1 %v970_v54 }
 0x2e2   : > { %v976_v50 = vpop.xlane.xlu1 %975 }
 0x2e3   : > { %v1039_v56 = vadd.f32 %v2717_v0, %v976_v50  ;;  %v972_v57 = vpop.xlane.xlu0 %971 }
 0x2e4   : > { %v1037_v58 = vadd.f32 %v2717_v0, %v972_v57 }
 0x2e5   : > { %v1701_v59 = vmul.f32 -1.442695, %v1039_v56 }
 0x2e6   : > { %v1699_v60 = vmul.f32 -1.442695, %v1037_v58  ;;  %v978_v61 = vpop.xlane.xlu1 %977 }
 0x2e7   : > { %2034 = vpow2.f32 %v1701_v59  ;;  %v1040_v62 = vadd.f32 %v2717_v0, %v978_v61  ;;  %v974_v63 = vpop.xlane.xlu0 %973 }
 0x2e8   : > { %2036 = vpow2.f32 %v1699_v60  ;;  %v1038_v55 = vadd.f32 %v2717_v0, %v974_v63 }
 0x2e9   : > { %v1702_v1 = vmul.f32 -1.442695, %v1040_v62 }
 0x2ea   : > { %v1700_v2 = vmul.f32 -1.442695, %v1038_v55 }
 0x2eb   : > { %2038 = vpow2.f32 %v1702_v1  ;;  %v984_v3 = vpop.xlane.xlu0 %983 }
 0x2ec   : > { %2040 = vpow2.f32 %v1700_v2  ;;  %v1043_v4 = vadd.f32 %v2717_v0, %v984_v3  ;;  %v986_v5 = vpop.xlane.xlu1 %985 }
 0x2ed   : > { %v1044_v6 = vadd.f32 %v2717_v0, %v986_v5 }
 0x2ee   : > { %v1705_v7 = vmul.f32 -1.442695, %v1043_v4 }
 0x2ef   : > { %v1706_v8 = vmul.f32 -1.442695, %v1044_v6  ;;  %v980_v9 = vpop.xlane.xlu0 %979 }
 0x2f0   : > { %2042 = vpow2.f32 %v1705_v7  ;;  %v1041_v10 = vadd.f32 %v2717_v0, %v980_v9  ;;  %v982_v11 = vpop.xlane.xlu1 %981 }
 0x2f1   : > { %v2035_v12 = vpop.eup %2034  ;;  %2044 = vpow2.f32 %v1706_v8  ;;  %v1042_v13 = vadd.f32 %v2717_v0, %v982_v11 }
 0x2f2   : > { %v2037_v14 = vpop.eup %2036  ;;  %v1167_v15 = vadd.f32 1.0, %v2035_v12  ;;  %v1703_v16 = vmul.f32 -1.442695, %v1041_v10 }
 0x2f3   : > { %v1165_v17 = vadd.f32 1.0, %v2037_v14  ;;  %v1704_v18 = vmul.f32 -1.442695, %v1042_v13  ;;  %v992_v19 = vpop.xlane.xlu0 %991 }
 0x2f4   : > { %2046 = vrcp.f32 %v1167_v15  ;;  %v1047_v20 = vadd.f32 %v2717_v0, %v992_v19  ;;  %v994_v21 = vpop.xlane.xlu1 %993 }
 0x2f5   : > { %v2039_v22 = vpop.eup %2038  ;;  %2048 = vrcp.f32 %v1165_v17  ;;  %v1048_v23 = vadd.f32 %v2717_v0, %v994_v21 }
 0x2f6   : > { %v2041_v24 = vpop.eup %2040  ;;  %v1168_v25 = vadd.f32 1.0, %v2039_v22  ;;  %2050 = vpow2.f32 %v1703_v16  ;;  %v1709_v26 = vmul.f32 -1.442695, %v1047_v20 }
 0x2f7   : > { %v1166_v27 = vadd.f32 1.0, %v2041_v24  ;;  %2052 = vpow2.f32 %v1704_v18  ;;  %v1710_v28 = vmul.f32 -1.442695, %v1048_v23  ;;  %v988_v29 = vpop.xlane.xlu0 %987 }
 0x2f8   : > { %2054 = vrcp.f32 %v1168_v25  ;;  %v1045_v30 = vadd.f32 %v2717_v0, %v988_v29  ;;  %v990_v31 = vpop.xlane.xlu1 %989 }
 0x2f9   : > { %2056 = vrcp.f32 %v1166_v27  ;;  %v1046_v32 = vadd.f32 %v2717_v0, %v990_v31 }
 0x2fa   : > { %v2043_v33 = vpop.eup %2042  ;;  %2058 = vpow2.f32 %v1709_v26  ;;  %v1707_v34 = vmul.f32 -1.442695, %v1045_v30 }
 0x2fb   : > { %v2045_v35 = vpop.eup %2044  ;;  %v1171_v36 = vadd.f32 1.0, %v2043_v33  ;;  %2060 = vpow2.f32 %v1710_v28  ;;  %v1708_v37 = vmul.f32 -1.442695, %v1046_v32  ;;  %v1000_v38 = vpop.xlane.xlu0 %999 }
 0x2fc   : > { %v1172_v39 = vadd.f32 1.0, %v2045_v35  ;;  %2062 = vpow2.f32 %v1707_v34  ;;  %v1051_v40 = vadd.f32 %v2717_v0, %v1000_v38  ;;  %v1002_v41 = vpop.xlane.xlu1 %1001 }
 0x2fd   : > { %2064 = vrcp.f32 %v1171_v36  ;;  %v1052_v42 = vadd.f32 %v2717_v0, %v1002_v41 }
 0x2fe   : > { %v2047_v43 = vpop.eup %2046  ;;  %2066 = vrcp.f32 %v1172_v39  ;;  %v1713_v44 = vmul.f32 -1.442695, %v1051_v40 }
 0x2ff   : > { %v2049_v45 = vpop.eup %2048  ;;  %1264 = vst.msk [vmem:[%s2734_s23 + $0x10] sm:$0xff] %vm1261_vm0, %v2047_v43  ;;  %2068 = vpow2.f32 %v1708_v37  ;;  %v1714_v46 = vmul.f32 -1.442695, %v1052_v42  ;;  %v996_v47 = vpop.xlane.xlu0 %995 }
 0x300   : > { %v2051_v48 = vpop.eup %2050  ;;  %1262 = vst.msk [vmem:[%s2734_s23] sm:$0xff] %vm1261_vm0, %v2049_v45  ;;  %2070 = vpow2.f32 %v1713_v44  ;;  %v1049_v49 = vadd.f32 %v2717_v0, %v996_v47  ;;  %v998_v51 = vpop.xlane.xlu1 %997 }
 0x301   : > { %v2053_v52 = vpop.eup %2052  ;;  %v1169_v53 = vadd.f32 1.0, %v2051_v48  ;;  %2072 = vpow2.f32 %v1714_v46  ;;  %v1050_v54 = vadd.f32 %v2717_v0, %v998_v51 }
 0x302   : > { %v2055_v50 = vpop.eup %2054  ;;  %v1170_v56 = vadd.f32 1.0, %v2053_v52  ;;  %v1711_v57 = vmul.f32 -1.442695, %v1049_v49 }
 0x303   : > { %v2057_v58 = vpop.eup %2056  ;;  %1265 = vst.msk [vmem:[%s2734_s23 + $0x18] sm:$0xff] %vm1261_vm0, %v2055_v50  ;;  %2074 = vrcp.f32 %v1169_v53  ;;  %v1712_v59 = vmul.f32 -1.442695, %v1050_v54  ;;  %v1008_v60 = vpop.xlane.xlu0 %1007 }
 0x304   : > { %v2059_v61 = vpop.eup %2058  ;;  %1263 = vst.msk [vmem:[%s2734_s23 + $0x8] sm:$0xff] %vm1261_vm0, %v2057_v58  ;;  %2076 = vrcp.f32 %v1170_v56  ;;  %v1055_v62 = vadd.f32 %v2717_v0, %v1008_v60  ;;  %v1010_v63 = vpop.xlane.xlu1 %1009 }
 0x305   : > { %v2061_v55 = vpop.eup %2060  ;;  %v1175_v1 = vadd.f32 1.0, %v2059_v61  ;;  %2078 = vpow2.f32 %v1711_v57  ;;  %v1056_v2 = vadd.f32 %v2717_v0, %v1010_v63 }
 0x306   : > { %v2063_v3 = vpop.eup %2062  ;;  %v1176_v4 = vadd.f32 1.0, %v2061_v55  ;;  %2080 = vpow2.f32 %v1712_v59  ;;  %v1717_v5 = vmul.f32 -1.442695, %v1055_v62 }
 0x307   : > { %v2065_v6 = vpop.eup %2064  ;;  %2082 = vrcp.f32 %v1175_v1  ;;  %v1173_v7 = vadd.f32 1.0, %v2063_v3  ;;  %v1718_v8 = vmul.f32 -1.442695, %v1056_v2  ;;  %v1004_v9 = vpop.xlane.xlu0 %1003 }
 0x308   : > { %v2067_v10 = vpop.eup %2066  ;;  %1268 = vst.msk [vmem:[%s2734_s23 + $0x30] sm:$0xff] %vm1261_vm0, %v2065_v6  ;;  %2084 = vrcp.f32 %v1176_v4  ;;  %v1053_v11 = vadd.f32 %v2717_v0, %v1004_v9  ;;  %v1006_v12 = vpop.xlane.xlu1 %1005 }
 0x309   : > { %v2069_v13 = vpop.eup %2068  ;;  %1269 = vst.msk [vmem:[%s2734_s23 + $0x38] sm:$0xff] %vm1261_vm0, %v2067_v10  ;;  %2086 = vrcp.f32 %v1173_v7  ;;  %v1054_v14 = vadd.f32 %v2717_v0, %v1006_v12 }
 0x30a   : > { %v2071_v15 = vpop.eup %2070  ;;  %v1174_v16 = vadd.f32 1.0, %v2069_v13  ;;  %2088 = vpow2.f32 %v1717_v5  ;;  %v1715_v19 = vmul.f32 -1.442695, %v1053_v11 }
 0x30b   : > { %v2073_v17 = vpop.eup %2072  ;;  %v1179_v18 = vadd.f32 1.0, %v2071_v15  ;;  %2090 = vpow2.f32 %v1718_v8  ;;  %v1016_v20 = vpop.xlane.xlu0 %1015  ;;  %v1716_v22 = vmul.f32 -1.442695, %v1054_v14 }
 0x30c   : > { %2092 = vrcp.f32 %v1174_v16  ;;  %v1180_v21 = vadd.f32 1.0, %v2073_v17  ;;  %v1059_v23 = vadd.f32 %v2717_v0, %v1016_v20  ;;  %v1018_v24 = vpop.xlane.xlu1 %1017 }
 0x30d   : > { %v2075_v25 = vpop.eup %2074  ;;  %2094 = vrcp.f32 %v1179_v18  ;;  %v1060_v26 = vadd.f32 %v2717_v0, %v1018_v24 }
 0x30e   : > { %v2077_v27 = vpop.eup %2076  ;;  %1266 = vst.msk [vmem:[%s2734_s23 + $0x20] sm:$0xff] %vm1261_vm0, %v2075_v25  ;;  %2096 = vrcp.f32 %v1180_v21  ;;  %v1721_v28 = vmul.f32 -1.442695, %v1059_v23 }
 0x30f   : > { %v2079_v29 = vpop.eup %2078  ;;  %1267 = vst.msk [vmem:[%s2734_s23 + $0x28] sm:$0xff] %vm1261_vm0, %v2077_v27  ;;  %2098 = vpow2.f32 %v1715_v19  ;;  %v1012_v30 = vpop.xlane.xlu0 %1011  ;;  %v1722_v33 = vmul.f32 -1.442695, %v1060_v26 }
 0x310   : > { %v2081_v31 = vpop.eup %2080  ;;  %v1177_v32 = vadd.f32 1.0, %v2079_v29  ;;  %2100 = vpow2.f32 %v1716_v22  ;;  %v1057_v34 = vadd.f32 %v2717_v0, %v1012_v30  ;;  %v1014_v35 = vpop.xlane.xlu1 %1013 }
 0x311   : > { %v2083_v36 = vpop.eup %2082  ;;  %v1178_v37 = vadd.f32 1.0, %v2081_v31  ;;  %2102 = vpow2.f32 %v1721_v28  ;;  %v1058_v38 = vadd.f32 %v2717_v0, %v1014_v35 }
 0x312   : > { %v2085_v39 = vpop.eup %2084  ;;  %1272 = vst.msk [vmem:[%s2734_s23 + $0x50] sm:$0xff] %vm1261_vm0, %v2083_v36  ;;  %2104 = vrcp.f32 %v1177_v32  ;;  %v1719_v40 = vmul.f32 -1.442695, %v1057_v34 }
 0x313   : > { %v2087_v41 = vpop.eup %2086  ;;  %1273 = vst.msk [vmem:[%s2734_s23 + $0x58] sm:$0xff] %vm1261_vm0, %v2085_v39  ;;  %2106 = vrcp.f32 %v1178_v37  ;;  %v1720_v42 = vmul.f32 -1.442695, %v1058_v38  ;;  %v1024_v43 = vpop.xlane.xlu0 %1023 }
 0x314   : > { %v2089_v44 = vpop.eup %2088  ;;  %1270 = vst.msk [vmem:[%s2734_s23 + $0x40] sm:$0xff] %vm1261_vm0, %v2087_v41  ;;  %2108 = vpow2.f32 %v1722_v33  ;;  %v1063_v45 = vadd.f32 %v2717_v0, %v1024_v43  ;;  %v1026_v46 = vpop.xlane.xlu1 %1025 }
 0x315   : > { %v2091_v47 = vpop.eup %2090  ;;  %v1183_v48 = vadd.f32 1.0, %v2089_v44  ;;  %2110 = vpow2.f32 %v1719_v40  ;;  %v1064_v49 = vadd.f32 %v2717_v0, %v1026_v46 }
 0x316   : > { %v2093_v51 = vpop.eup %2092  ;;  %v1184_v52 = vadd.f32 1.0, %v2091_v47  ;;  %2112 = vpow2.f32 %v1720_v42  ;;  %v1725_v53 = vmul.f32 -1.442695, %v1063_v45 }
 0x317   : > { %v2095_v54 = vpop.eup %2094  ;;  %1271 = vst.msk [vmem:[%s2734_s23 + $0x48] sm:$0xff] %vm1261_vm0, %v2093_v51  ;;  %2114 = vrcp.f32 %v1183_v48  ;;  %v1726_v50 = vmul.f32 -1.442695, %v1064_v49  ;;  %v1020_v56 = vpop.xlane.xlu0 %1019 }
 0x318   : > { %v2097_v57 = vpop.eup %2096  ;;  %1276 = vst.msk [vmem:[%s2734_s23 + $0x70] sm:$0xff] %vm1261_vm0, %v2095_v54  ;;  %2116 = vrcp.f32 %v1184_v52  ;;  %v1061_v58 = vadd.f32 %v2717_v0, %v1020_v56  ;;  %v1022_v59 = vpop.xlane.xlu1 %1021 }
 0x319   : > { %v2099_v60 = vpop.eup %2098  ;;  %1277 = vst.msk [vmem:[%s2734_s23 + $0x78] sm:$0xff] %vm1261_vm0, %v2097_v57  ;;  %2118 = vpow2.f32 %v1725_v53  ;;  %v1062_v61 = vadd.f32 %v2717_v0, %v1022_v59 }
 0x31a   : > { %v2101_v62 = vpop.eup %2100  ;;  %v1181_v63 = vadd.f32 1.0, %v2099_v60  ;;  %2120 = vpow2.f32 %v1726_v50  ;;  %v1723_v2 = vmul.f32 -1.442695, %v1061_v58 }
 0x31b   : > { %v2103_v55 = vpop.eup %2102  ;;  %v1182_v1 = vadd.f32 1.0, %v2101_v62  ;;  %v1028_v3 = vpop.xlane.xlu0 %1027  ;;  %v1724_v6 = vmul.f32 -1.442695, %v1062_v61 }
 0x31c   : > { %v2105_v4 = vpop.eup %2104  ;;  %2122 = vrcp.f32 %v1181_v63  ;;  %v1187_v5 = vadd.f32 1.0, %v2103_v55  ;;  %v1065_v7 = vadd.f32 %v2717_v0, %v1028_v3 }
 0x31d   : > { %v2107_v8 = vpop.eup %2106  ;;  %1274 = vst.msk [vmem:[%s2734_s23 + $0x60] sm:$0xff] %vm1261_vm0, %v2105_v4  ;;  %2124 = vrcp.f32 %v1182_v1  ;;  %v1030_v9 = vpop.xlane.xlu1 %1029 }
 0x31e   : > { %v2109_v10 = vpop.eup %2108  ;;  %1275 = vst.msk [vmem:[%s2734_s23 + $0x68] sm:$0xff] %vm1261_vm0, %v2107_v8  ;;  %2126 = vrcp.f32 %v1187_v5  ;;  %v1066_v11 = vadd.f32 %v2717_v0, %v1030_v9  ;;  %v1727_v17 = vmul.f32 -1.442695, %v1065_v7 }
 0x31f   : > { %v2111_v12 = vpop.eup %2110  ;;  %v1188_v13 = vadd.f32 1.0, %v2109_v10  ;;  %2128 = vpow2.f32 %v1723_v2  ;;  %v1032_v14 = vpop.xlane.xlu0 %1031 }
 0x320   : > { %v2113_v15 = vpop.eup %2112  ;;  %v1185_v16 = vadd.f32 1.0, %v2111_v12  ;;  %2130 = vpow2.f32 %v1724_v6  ;;  %v1067_v18 = vadd.f32 %v2717_v0, %v1032_v14  ;;  %v1728_v21 = vmul.f32 -1.442695, %v1066_v11 }
 0x321   : > { %v2115_v19 = vpop.eup %2114  ;;  %2132 = vrcp.f32 %v1188_v13  ;;  %v1186_v20 = vadd.f32 1.0, %v2113_v15  ;;  %v1034_v22 = vpop.xlane.xlu1 %1033 }
 0x322   : > { %v2117_v23 = vpop.eup %2116  ;;  %1280 = vst.msk [vmem:[%s2734_s23 + $0x90] sm:$0xff] %vm1261_vm0, %v2115_v19  ;;  %2134 = vrcp.f32 %v1185_v16  ;;  %v1068_v24 = vadd.f32 %v2717_v0, %v1034_v22  ;;  %v1729_v28 = vmul.f32 -1.442695, %v1067_v18 }
 0x323   : > { %v2119_v25 = vpop.eup %2118  ;;  %1281 = vst.msk [vmem:[%s2734_s23 + $0x98] sm:$0xff] %vm1261_vm0, %v2117_v23  ;;  %2136 = vrcp.f32 %v1186_v20 }
 0x324   : > { %v2121_v26 = vpop.eup %2120  ;;  %v1191_v27 = vadd.f32 1.0, %v2119_v25  ;;  %2138 = vpow2.f32 %v1727_v17  ;;  %v1730_v30 = vmul.f32 -1.442695, %v1068_v24 }
 0x325   : > { %v1192_v29 = vadd.f32 1.0, %v2121_v26  ;;  %2140 = vpow2.f32 %v1728_v21 }
 0x326   : > { %v2123_v31 = vpop.eup %2122  ;;  %2142 = vrcp.f32 %v1191_v27 }
 0x327   : > { %v2125_v32 = vpop.eup %2124  ;;  %1278 = vst.msk [vmem:[%s2734_s23 + $0x80] sm:$0xff] %vm1261_vm0, %v2123_v31  ;;  %2144 = vrcp.f32 %v1192_v29 }
 0x328   : > { %v2127_v0 = vpop.eup %2126  ;;  %1279 = vst.msk [vmem:[%s2734_s23 + $0x88] sm:$0xff] %vm1261_vm0, %v2125_v32  ;;  %2146 = vpow2.f32 %v1729_v28 }
 0x329   : > { %v2129_v33 = vpop.eup %2128  ;;  %1284 = vst.msk [vmem:[%s2734_s23 + $0xb0] sm:$0xff] %vm1261_vm0, %v2127_v0  ;;  %2148 = vpow2.f32 %v1730_v30 }
 0x32a   : > { %v2131_v34 = vpop.eup %2130  ;;  %v1189_v35 = vadd.f32 1.0, %v2129_v33 }
 0x32b   : > { %v2133_v36 = vpop.eup %2132  ;;  %v1190_v37 = vadd.f32 1.0, %v2131_v34 }
 0x32c   : > { %v2135_v38 = vpop.eup %2134  ;;  %1285 = vst.msk [vmem:[%s2734_s23 + $0xb8] sm:$0xff] %vm1261_vm0, %v2133_v36  ;;  %2150 = vrcp.f32 %v1189_v35 }
 0x32d   : > { %v2137_v39 = vpop.eup %2136  ;;  %1282 = vst.msk [vmem:[%s2734_s23 + $0xa0] sm:$0xff] %vm1261_vm0, %v2135_v38  ;;  %2152 = vrcp.f32 %v1190_v37 }
 0x32e   : > { %v2139_v40 = vpop.eup %2138  ;;  %1283 = vst.msk [vmem:[%s2734_s23 + $0xa8] sm:$0xff] %vm1261_vm0, %v2137_v39 }
 0x32f   : > { %v2141_v41 = vpop.eup %2140  ;;  %v1193_v42 = vadd.f32 1.0, %v2139_v40 }
 0x330   : > { %v2143_v43 = vpop.eup %2142  ;;  %v1194_v44 = vadd.f32 1.0, %v2141_v41 }
 0x331   : > { %v2145_v45 = vpop.eup %2144  ;;  %1288 = vst.msk [vmem:[%s2734_s23 + $0xd0] sm:$0xff] %vm1261_vm0, %v2143_v43  ;;  %2154 = vrcp.f32 %v1193_v42 }
 0x332   : > { %v2147_v46 = vpop.eup %2146  ;;  %1289 = vst.msk [vmem:[%s2734_s23 + $0xd8] sm:$0xff] %vm1261_vm0, %v2145_v45  ;;  %2156 = vrcp.f32 %v1194_v44 }
 0x333   : > { %v2149_v47 = vpop.eup %2148  ;;  %v1195_v48 = vadd.f32 1.0, %v2147_v46 }
 0x334   : > { %v1196_v49 = vadd.f32 1.0, %v2149_v47 }
 0x335   : > { %2158 = vrcp.f32 %v1195_v48 }
 0x336   : > { %v2151_v51 = vpop.eup %2150  ;;  %2160 = vrcp.f32 %v1196_v49 }
 0x337   : > { %v2153_v52 = vpop.eup %2152  ;;  %1286 = vst.msk [vmem:[%s2734_s23 + $0xc0] sm:$0xff] %vm1261_vm0, %v2151_v51 }
 0x338   : > { %1287 = vst.msk [vmem:[%s2734_s23 + $0xc8] sm:$0xff] %vm1261_vm0, %v2153_v52 }
 0x33b   : > { %v2155_v53 = vpop.eup %2154  ;;  %1300 = sbr.rel (!%p2981_p6) target bundleno = 890 (0x37a), region = 64 }
 0x33c   : > { %v2157_v54 = vpop.eup %2156  ;;  %1290 = vst.msk [vmem:[%s2734_s23 + $0xe0] sm:$0xff] %vm1261_vm0, %v2155_v53 }
 0x33d   : > { %1291 = vst.msk [vmem:[%s2734_s23 + $0xe8] sm:$0xff] %vm1261_vm0, %v2157_v54 }
 0x33f   : > { %v2159_v50 = vpop.eup %2158 }
 0x340   : > { %v2161_v56 = vpop.eup %2160  ;;  %1292 = vst.msk [vmem:[%s2734_s23 + $0xf0] sm:$0xff] %vm1261_vm0, %v2159_v50 }
 0x341   : > { %1293 = vst.msk [vmem:[%s2734_s23 + $0xf8] sm:$0xff] %vm1261_vm0, %v2161_v56 }
 0x342   : > { %s2994_s19 = smov (!%p1303_p7, %s1302_s19), 32 }
 0x343   : > { %s1733_s18 = sshll.u32 %s2994_s19, 7 }
 0x344   : > { %p1736_p9 = scmp.eq.s32.totalorder %s1733_s18, 0 }
 0x345   : > { %s2831_s13 = sshrl.u32 (!%p1736_p9), %s2994_s19, 5 }
 0x346   : > { %1311 = sbr.rel (%p1736_p9) target bundleno = 890 (0x37a), region = 68  ;;  %p1737_p12 = scmp.le.s32.totalorder (!%p1736_p9), %s2831_s13, 0 }
 0x34d   : > { %1598 = sbr.rel (%p1737_p12) target bundleno = 869 (0x365), region = 150  ;;  %s2982_s6 = smov (!%p1737_p12), %s2825_s15 }
 0x34e   : > { %s2983_s20 = smov (!%p1737_p12), %s2734_s23  ;;  %s2840_s21 = smov (!%p1737_p12), 0  }
 0x34f   : > { %s2842_s29 = smov (!%p1737_p12), 0  }
 0x354 LB: >> { %v1435_v57 = vld [vmem:[%s2324_s20] sm:$0xff]  ;;  %v1437_v58 = vld [vmem:[%s2324_s20 + $0x8] sm:$0xff]  ;;  %v1439_v59 = vld [vmem:[%s2324_s20 + $0x10] sm:$0xff]  ;;  %s1499_s12 = sadd.s32 1, %s2328_s21  ;;  %s1429_s29 = sadd.s32 1, %s2332_s29   ;;  %s2332_s29 = sphi %s2842_s29, %s1429_s29   ;;  %s2328_s21 = sphi %s2840_s21, %s2986_s21   ;;  %s2324_s20 = sphi %s2983_s20, %s2985_s20   ;;  %s2320_s6 = sphi %s2982_s6, %s2984_s6  }
 0x355   : >> { %1436 = vst [vmem:[%s2320_s6] sm:$0xff] %v1435_v57  ;;  %1438 = vst [vmem:[%s2320_s6 + $0x8] sm:$0xff] %v1437_v58  ;;  %v1441_v60 = vld [vmem:[%s2324_s20 + $0x18] sm:$0xff]  ;;  %v1443_v61 = vld [vmem:[%s2324_s20 + $0x20] sm:$0xff]  ;;  %p1500_p0 = scmp.ge.s32.totalorder %s1499_s12, %s2831_s13  ;;  %p1428_p4 = scmp.ge.s32.totalorder %s1429_s29, %s2831_s13 }
 0x356   : >> { %1440 = vst [vmem:[%s2320_s6 + $0x10] sm:$0xff] %v1439_v59  ;;  %v1445_v62 = vld [vmem:[%s2324_s20 + $0x28] sm:$0xff]  ;;  %1442 = vst [vmem:[%s2320_s6 + $0x18] sm:$0xff] %v1441_v60  ;;  %v1447_v63 = vld [vmem:[%s2324_s20 + $0x30] sm:$0xff] }
 0x357   : >> { %1444 = vst [vmem:[%s2320_s6 + $0x20] sm:$0xff] %v1443_v61  ;;  %1446 = vst [vmem:[%s2320_s6 + $0x28] sm:$0xff] %v1445_v62  ;;  %v1449_v55 = vld [vmem:[%s2324_s20 + $0x38] sm:$0xff]  ;;  %v1451_v1 = vld [vmem:[%s2324_s20 + $0x40] sm:$0xff]  ;;  %s2996_s12 = smov (%p1500_p0, %s1499_s12), 0 }
 0x358   : >> { %1448 = vst [vmem:[%s2320_s6 + $0x30] sm:$0xff] %v1447_v63  ;;  %1450 = vst [vmem:[%s2320_s6 + $0x38] sm:$0xff] %v1449_v55  ;;  %v1453_v2 = vld [vmem:[%s2324_s20 + $0x48] sm:$0xff]  ;;  %v1455_v3 = vld [vmem:[%s2324_s20 + $0x50] sm:$0xff]  ;;  %s1738_s14 = sshll.u32 %s2996_s12, 8  ;;  %s2986_s21 = smov %s2996_s12 }
 0x359   : >> { %1452 = vst [vmem:[%s2320_s6 + $0x40] sm:$0xff] %v1451_v1  ;;  %v1457_v4 = vld [vmem:[%s2324_s20 + $0x58] sm:$0xff]  ;;  %1454 = vst [vmem:[%s2320_s6 + $0x48] sm:$0xff] %v1453_v2  ;;  %v1459_v5 = vld [vmem:[%s2324_s20 + $0x60] sm:$0xff]  ;;  %s2898_s17 = scalar_lea.vmem %s2734_s23, %s1738_s14 [#allocation8]   ;;  %s1505_s26 = scalar_lea.vmem %s2825_s15, %s1738_s14  }
 0x35a   : >> { %1456 = vst [vmem:[%s2320_s6 + $0x50] sm:$0xff] %v1455_v3  ;;  %1458 = vst [vmem:[%s2320_s6 + $0x58] sm:$0xff] %v1457_v4  ;;  %v1461_v6 = vld [vmem:[%s2324_s20 + $0x68] sm:$0xff]  ;;  %v1463_v7 = vld [vmem:[%s2324_s20 + $0x70] sm:$0xff] }
 0x35b   : >> { %1460 = vst [vmem:[%s2320_s6 + $0x60] sm:$0xff] %v1459_v5  ;;  %1462 = vst [vmem:[%s2320_s6 + $0x68] sm:$0xff] %v1461_v6  ;;  %v1465_v8 = vld [vmem:[%s2324_s20 + $0x78] sm:$0xff]  ;;  %v1467_v9 = vld [vmem:[%s2324_s20 + $0x80] sm:$0xff] }
 0x35c   : >> { %1464 = vst [vmem:[%s2320_s6 + $0x70] sm:$0xff] %v1463_v7  ;;  %v1469_v10 = vld [vmem:[%s2324_s20 + $0x88] sm:$0xff]  ;;  %1466 = vst [vmem:[%s2320_s6 + $0x78] sm:$0xff] %v1465_v8  ;;  %v1471_v11 = vld [vmem:[%s2324_s20 + $0x90] sm:$0xff] }
 0x35d   : >> { %1468 = vst [vmem:[%s2320_s6 + $0x80] sm:$0xff] %v1467_v9  ;;  %1470 = vst [vmem:[%s2320_s6 + $0x88] sm:$0xff] %v1469_v10  ;;  %v1473_v12 = vld [vmem:[%s2324_s20 + $0x98] sm:$0xff]  ;;  %v1475_v13 = vld [vmem:[%s2324_s20 + $0xa0] sm:$0xff] }
 0x35e   : >> { %1472 = vst [vmem:[%s2320_s6 + $0x90] sm:$0xff] %v1471_v11  ;;  %1474 = vst [vmem:[%s2320_s6 + $0x98] sm:$0xff] %v1473_v12  ;;  %v1477_v14 = vld [vmem:[%s2324_s20 + $0xa8] sm:$0xff]  ;;  %v1479_v15 = vld [vmem:[%s2324_s20 + $0xb0] sm:$0xff]  ;;  %1431 = sbr.rel (!%p1428_p4) target bundleno = 852 (0x354), region = 156 }
 0x35f   : >> { %1476 = vst [vmem:[%s2320_s6 + $0xa0] sm:$0xff] %v1475_v13  ;;  %v1481_v16 = vld [vmem:[%s2324_s20 + $0xb8] sm:$0xff]  ;;  %1478 = vst [vmem:[%s2320_s6 + $0xa8] sm:$0xff] %v1477_v14  ;;  %v1483_v17 = vld [vmem:[%s2324_s20 + $0xc0] sm:$0xff] }
 0x360   : >> { %1480 = vst [vmem:[%s2320_s6 + $0xb0] sm:$0xff] %v1479_v15  ;;  %1482 = vst [vmem:[%s2320_s6 + $0xb8] sm:$0xff] %v1481_v16  ;;  %v1485_v18 = vld [vmem:[%s2324_s20 + $0xc8] sm:$0xff]  ;;  %v1487_v19 = vld [vmem:[%s2324_s20 + $0xd0] sm:$0xff] }
 0x361   : >> { %1484 = vst [vmem:[%s2320_s6 + $0xc0] sm:$0xff] %v1483_v17  ;;  %1486 = vst [vmem:[%s2320_s6 + $0xc8] sm:$0xff] %v1485_v18  ;;  %v1489_v20 = vld [vmem:[%s2324_s20 + $0xd8] sm:$0xff]  ;;  %v1491_v21 = vld [vmem:[%s2324_s20 + $0xe0] sm:$0xff] }
 0x362   : >> { %1488 = vst [vmem:[%s2320_s6 + $0xd0] sm:$0xff] %v1487_v19  ;;  %v1493_v22 = vld [vmem:[%s2324_s20 + $0xe8] sm:$0xff]  ;;  %1490 = vst [vmem:[%s2320_s6 + $0xd8] sm:$0xff] %v1489_v20  ;;  %v1495_v23 = vld [vmem:[%s2324_s20 + $0xf0] sm:$0xff] }
 0x363   : >> { %1492 = vst [vmem:[%s2320_s6 + $0xe0] sm:$0xff] %v1491_v21  ;;  %1494 = vst [vmem:[%s2320_s6 + $0xe8] sm:$0xff] %v1493_v22  ;;  %v1497_v24 = vld [vmem:[%s2324_s20 + $0xf8] sm:$0xff]  ;;  %s2985_s20 = smov %s2898_s17 }
 0x364   : >> { %1496 = vst [vmem:[%s2320_s6 + $0xf0] sm:$0xff] %v1495_v23  ;;  %1498 = vst [vmem:[%s2320_s6 + $0xf8] sm:$0xff] %v1497_v24  ;;  %s2984_s6 = smov %s1505_s26 }
 0x365 PF: > { %s2939_s8 = sand.u32 31, %s2994_s19   ;;  %s1750_s16 = sshll.u32 %s2831_s13, 8 }
 0x366   : > { %s1510_s22 = scalar_lea.vmem %s2734_s23, %s1750_s16 [#allocation8]   ;;  %s1512_s24 = scalar_lea.vmem %s2825_s15, %s1750_s16  }
 0x367   : > { %p1743_p1 = scmp.le.s32.totalorder %s2939_s8, 0 }
 0x368   : > { %s2334_s25 = smov (!%p1743_p1), %s1512_s24   ;;  %s2338_s11 = smov (!%p1743_p1), %s1510_s22  }
 0x369   : > { %1612 = sbr.rel (%p1743_p1) target bundleno = 890 (0x37a), region = 161  ;;  %s2342_s9 = smov (!%p1743_p1), 0  }
 0x36a   : > { %s2346_s18 = smov (!%p1743_p1), 0  }
 0x370 LB: >> { %v1522_v25 = vld [vmem:[%s2340_s11] sm:$0xff]  ;;  %s1524_s19 = sadd.s32 1, %s2344_s9  ;;  %s1516_s18 = sadd.s32 1, %s2348_s18   ;;  %s2348_s18 = sphi %s2346_s18, %s1516_s18   ;;  %s2344_s9 = sphi %s2342_s9, %s2343_s9   ;;  %s2340_s11 = sphi %s2338_s11, %s1529_s11   ;;  %s2336_s25 = sphi %s2334_s25, %s1530_s25  }
 0x371   : >> { %1523 = vst [vmem:[%s2336_s25] sm:$0xff] %v1522_v25  ;;  %p1525_p5 = scmp.ge.s32.totalorder %s1524_s19, %s2939_s8  ;;  %p1515_p8 = scmp.ge.s32.totalorder %s1516_s18, %s2939_s8 }
 0x373   : >> { %s2998_s19 = smov (%p1525_p5, %s1524_s19), 0  ;;  %1518 = sbr.rel (!%p1515_p8) target bundleno = 880 (0x370), region = 167 }
 0x374   : >> { %s1744_s23 = sshll.u32 %s2998_s19, 3  ;;  %s2343_s9 = smov %s2998_s19  }
 0x375   : >> { %s1529_s11 = scalar_lea.vmem %s1510_s22, %s1744_s23 [#allocation8]   ;;  %s1530_s25 = scalar_lea.vmem %s1512_s24, %s1744_s23  }
 0x37a PF: > { %p19_p11 = scmp.ge.s32.totalorder %s2422_s30, 4   ;;  %s2987_s26 = smov %s2308_s27 }
 0x37b   : > { %s2988_s27 = smov %s2312_s28  ;;  %s2989_s28 = smov %s2432_s10 }
 0x37c   : > { %s2990_s29 = smov %s2422_s30  ;;  %21 = sbr.rel (!%p19_p11) target bundleno = 6 (0x6), region = 178 }
 0x383   :  { %1546 = vsyncpa [#allocation4], 1 }
 0x384   :  { %1548 = vsyncpa [#allocation4 + $0x1], 1 }
 0x385   :  { %1549 = vsyncpa [#allocation6], 1 }

</bundles_post_ra>
